<compile_context>
chip_gen: v5e
topology: v5e:2x2
jax: 0.10.0
libtpu: 0.0.40
codegen_flags: <defaults>
</compile_context>

<pallas_src>
import functools

import jax
import jax.numpy as jnp
from jax.experimental import pallas as pl
from jax.experimental.pallas import tpu as pltpu

EMB_DIM = 512
HIDDEN = 64
N_HEADS = 15
HEAD_DIM = 16
EPS = 1e-5

# Fused, 128-lane-aligned column layouts
W1_COLS = 384    # [xp 0:240 | pad 240:256 | exp0 256:320 | va0 320:384]
W2_K = 256       # xp zero-padded to 256 input rows (matches 256-wide MXU)
W2_COLS = 256    # [au_flat 0:30 | pad | fau 32:62 | pad | exp 128:135 | va 136:138 | pad]
W3_K = 128       # [exp0 | va0] (adjacent in y1 -> no concat needed)
OUT_COLS = 256   # == W2_COLS; output slab layout equals y2/y3 layout


# ----------------------------------------------------------------------------
# Pallas kernel: four serial bf16 matmuls, two bias adds, one relu, one add.
# ----------------------------------------------------------------------------
def _multitask_kernel(x_ref, wemb_ref, w1_ref, w2_ref, w3_ref, bias_ref, out_ref):
    f32 = jnp.float32

    def bdot(a, w_ref):
        # bf16 MXU operands, f32 accumulation
        return jnp.dot(a.astype(jnp.bfloat16), w_ref[...],
                       preferred_element_type=f32)

    # Stub embedding (external pretrained net unavailable): x is already bf16.
    emb = jnp.dot(x_ref[...], wemb_ref[...], preferred_element_type=f32)  # [B, 512]

    # Stage 1: AU_BN1/Exp_BN1/VA_BN1 + AU_linear_p* + Exp_linear1 + VA_linear1
    # all folded into one (512, 384) weight.  Slices below are vreg-aligned.
    y1 = bdot(emb, w1_ref) + bias_ref[0:1, :]          # [B, 384]
    xp_pad = y1[:, 0:256]                              # AU head features (+16 zero cols)
    ev = jnp.maximum(y1[:, 256:384], 0.0)              # [relu(Exp_linear1) | relu(VA_linear1)]

    # Stage 2: AU_linear_last* | AU_final_linear | au_inter-routed Exp/VA
    # contributions, all folded into one (256, 256) weight (rows 240:256 zero).
    y2 = bdot(xp_pad, w2_ref) + bias_ref[1:2, 0:256]   # [B, 256]

    # Stage 3: exp0/va0 partial products (Exp_linear2, Exp_inter, VA_linear2
    # and their BN2s folded host-side).  Only cols 128:138 are nonzero.
    y3 = bdot(ev, w3_ref)                              # [B, 256]

    # Single lane-dense 256-wide store; wrapper slices au/fau/exp/va.
    out_ref[...] = y2 + y3


@jax.jit
def multitask_forward(x_flat_bf16, w_emb_bf16, fp):
    """x_flat_bf16: [B, C*H*W] bf16; w_emb_bf16: [C*H*W, 512] bf16; fp: folded params."""
    B, K_IN = x_flat_bf16.shape
    vmem = functools.partial(pl.BlockSpec, memory_space=pltpu.MemorySpace.VMEM)

    flops = 2 * B * (K_IN * EMB_DIM + EMB_DIM * W1_COLS + W2_K * W2_COLS + W3_K * W2_COLS)
    bytes_accessed = (
        x_flat_bf16.size * 2 + w_emb_bf16.size * 2
        + fp["W1"].size * 2 + fp["W2"].size * 2 + fp["W3"].size * 2
        + fp["bias"].size * 4 + B * OUT_COLS * 4)

    out = pl.pallas_call(
        _multitask_kernel,
        out_shape=jax.ShapeDtypeStruct((B, OUT_COLS), jnp.float32),
        in_specs=[vmem() for _ in range(6)],
        out_specs=vmem(),
        cost_estimate=pl.CostEstimate(
            flops=flops, transcendentals=0, bytes_accessed=bytes_accessed),
    )(x_flat_bf16, w_emb_bf16, fp["W1"], fp["W2"], fp["W3"], fp["bias"])

    va = out[:, 136:138]
    au = out[:, 0:30].reshape(B, N_HEADS, 2)
    fau = out[:, 32:62].reshape(B, N_HEADS, 2)
    exp = out[:, 128:135]
    return va, au, fau, exp
    # NOTE: if deployment batch grows beyond ~128, add a 1-D grid over batch:
    # block (TB, features), weight BlockSpecs with index_map lambda i: (0, 0),
    # dimension_semantics=("parallel",) -- this amortizes weight DMA and (on
    # v7x) uses both TensorCores.


# ----------------------------------------------------------------------------
# Deterministic per-layer parameters (PyTorch-module layout, f32)
# ----------------------------------------------------------------------------
def make_raw_params(key):
    ks = iter(jax.random.split(key, 64))

    def rnd(shape, scale=0.05):
        return (scale * jax.random.normal(next(ks), shape)).astype(jnp.float32)

    def bn_params(dim):
        gamma = 1.0 + 0.1 * jax.random.normal(next(ks), (dim,))
        beta = 0.1 * jax.random.normal(next(ks), (dim,))
        mean = 0.1 * jax.random.normal(next(ks), (dim,))
        var = jnp.abs(1.0 + 0.1 * jax.random.normal(next(ks), (dim,)))
        return jnp.stack([gamma, beta, mean, var]).astype(jnp.float32)  # (4, dim)

    p = {}
    p["bn_au1"] = bn_params(EMB_DIM)
    p["bn_exp1"] = bn_params(EMB_DIM)
    p["bn_va1"] = bn_params(EMB_DIM)
    p["bn_exp2"] = bn_params(2 * HIDDEN)
    p["bn_va2"] = bn_params(2 * HIDDEN)

    # AU_linear_p1..p15 stacked: W^T (512, 240), bias (1, 240)
    wp = rnd((N_HEADS, HEAD_DIM, EMB_DIM))
    p["wp"] = jnp.transpose(wp.reshape(N_HEADS * HEAD_DIM, EMB_DIM))   # (512, 240)
    p["bp"] = rnd((1, N_HEADS * HEAD_DIM))

    # AU_linear_last1..15 (16 -> 2, no bias) as a (240, 30) block-sparse matrix.
    # INTENTIONAL bug reproduction from the reference forward(): heads 14 and 15
    # (indices 13, 14) read x12's features (index 11).  Keep it.
    w_last = rnd((N_HEADS, 2, HEAD_DIM))
    blk = jnp.zeros((N_HEADS * HEAD_DIM, N_HEADS * 2), dtype=jnp.float32)
    for i in range(N_HEADS):
        src = 11 if i in (13, 14) else i
        blk = blk.at[src * HEAD_DIM:(src + 1) * HEAD_DIM, i * 2:(i + 1) * 2].set(
            jnp.transpose(w_last[i]))
    p["wlast"] = blk

    p["wint"] = rnd((HIDDEN, N_HEADS * HEAD_DIM)).T       # (240, 64)  AU_inter
    p["bint"] = rnd((1, HIDDEN))
    p["wfin"] = rnd((30, 30)).T                           # (30, 30)   AU_final_linear
    p["bfin"] = rnd((1, 30))
    p["wexp1"] = rnd((HIDDEN, EMB_DIM)).T                 # (512, 64)  Exp_linear1
    p["bexp1"] = rnd((1, HIDDEN))
    p["wexp2"] = rnd((7, 2 * HIDDEN)).T                   # (128, 7)   Exp_linear2
    p["bexp2"] = rnd((1, 7))
    p["wexpint"] = rnd((HIDDEN, 2 * HIDDEN)).T            # (128, 64)  Exp_inter
    p["bexpint"] = rnd((1, HIDDEN))
    p["wva1"] = rnd((HIDDEN, EMB_DIM)).T                  # (512, 64)  VA_linear1
    p["bva1"] = rnd((1, HIDDEN))
    p["wva2"] = rnd((2, 2 * HIDDEN)).T                    # (128, 2)   VA_linear2
    p["bva2"] = rnd((1, 2))
    return p


# ----------------------------------------------------------------------------
# Host-side folding: BN -> weights, stage-3/4 elimination, aligned layouts.
# ----------------------------------------------------------------------------
def fold_params(p):
    def bn_scale_shift(bnp):
        g, b, m, v = bnp[0], bnp[1], bnp[2], bnp[3]
        s = g / jnp.sqrt(v + EPS)
        return s, b - m * s

    s_au, t_au = bn_scale_shift(p["bn_au1"])
    s_e1, t_e1 = bn_scale_shift(p["bn_exp1"])
    s_v1, t_v1 = bn_scale_shift(p["bn_va1"])
    s_e2, t_e2 = bn_scale_shift(p["bn_exp2"])
    s_v2, t_v2 = bn_scale_shift(p["bn_va2"])

    # ---- Stage 1 (LHS = AU_BN1(emb)): columns
    #   [0:240) AU_linear_p1..15 | [240:256) zero | [256:320) Exp_linear1 | [320:384) VA_linear1
    w_exp1f = s_e1[:, None] * p["wexp1"]                       # Exp_BN1 folded
    b_exp1f = t_e1 @ p["wexp1"] + p["bexp1"][0]
    w_va1f = s_v1[:, None] * p["wva1"]                         # VA_BN1 folded
    b_va1f = t_v1 @ p["wva1"] + p["bva1"][0]
    pad16 = jnp.zeros((EMB_DIM, 16), jnp.float32)
    W1c = jnp.concatenate([p["wp"], pad16, w_exp1f, w_va1f], axis=1)    # (512, 384)
    b1c = jnp.concatenate([p["bp"][0], jnp.zeros((16,), jnp.float32),
                           b_exp1f, b_va1f])
    W1 = s_au[:, None] * W1c                                   # AU_BN1 folded
    b1 = t_au @ W1c + b1c

    # ---- Exp_BN2 / VA_BN2 folds and half-splits (au_inter|exp0, exp_inter_out|va0)
    A = s_e2[:, None] * p["wexp2"]                             # (128, 7)
    bA = t_e2 @ p["wexp2"] + p["bexp2"][0]                     # (7,)
    V = s_v2[:, None] * p["wva2"]                              # (128, 2)
    bV = t_v2 @ p["wva2"] + p["bva2"][0]                       # (2,)
    A_top, A_bot = A[:HIDDEN], A[HIDDEN:]                      # act on au_inter / exp0
    V_top, V_bot = V[:HIDDEN], V[HIDDEN:]                      # act on exp_inter_out / va0
    EiT, EiB = p["wexpint"][:HIDDEN], p["wexpint"][HIDDEN:]    # Exp_inter halves
    bEi = p["bexpint"][0]

    # exp_out = au_inter @ A_top + exp0 @ A_bot + bA
    # va_out  = au_inter @ (EiT@V_top) + exp0 @ (EiB@V_top) + va0 @ V_bot
    #           + (bEi@V_top + bV)
    # au_inter = xp @ wint + bint  ->  its contributions fold into W2 columns.

    # ---- Stage 2 (LHS = xp zero-padded to 256): columns
    #   [0:30) AU_out | [32:62) final_AU_out | [128:135) exp partial | [136:138) va partial
    W2 = jnp.zeros((W2_K, W2_COLS), jnp.float32)
    b2 = jnp.zeros((W2_COLS,), jnp.float32)
    W2 = W2.at[0:240, 0:30].set(p["wlast"])
    W2 = W2.at[0:240, 32:62].set(p["wlast"] @ p["wfin"])       # AU_final_linear folded
    b2 = b2.at[32:62].set(p["bfin"][0])
    W2 = W2.at[0:240, 128:135].set(p["wint"] @ A_top)
    b2 = b2.at[128:135].set(p["bint"][0] @ A_top + bA)
    W2 = W2.at[0:240, 136:138].set(p["wint"] @ (EiT @ V_top))
    b2 = b2.at[136:138].set(p["bint"][0] @ (EiT @ V_top) + bEi @ V_top + bV)

    # ---- Stage 3 (LHS = relu(y1[:,256:384]) = [exp0 | va0]): columns
    #   [128:135) exp partial | [136:138) va partial; everything else zero.
    W3 = jnp.zeros((W3_K, W2_COLS), jnp.float32)
    W3 = W3.at[0:HIDDEN, 128:135].set(A_bot)
    W3 = W3.at[0:HIDDEN, 136:138].set(EiB @ V_top)
    W3 = W3.at[HIDDEN:, 136:138].set(V_bot)

    bias = jnp.zeros((2, W1_COLS), jnp.float32)
    bias = bias.at[0, :].set(b1)
    bias = bias.at[1, 0:W2_COLS].set(b2)

    return {"W1": W1, "W2": W2, "W3": W3, "bias": bias}


def cast_folded_bf16(fp):
    out = {k: v.astype(jnp.bfloat16) for k, v in fp.items() if k != "bias"}
    out["bias"] = fp["bias"]
    return out


# ----------------------------------------------------------------------------
# Pure-JAX references
# ----------------------------------------------------------------------------
def reference_forward_original(emb_raw, p):
    """Per-layer math of the PyTorch forward() (BN inference mode), f32."""
    def bn(x, bnp):
        g, b, m, v = bnp[0], bnp[1], bnp[2], bnp[3]
        return (x - m) / jnp.sqrt(v + EPS) * g + b

    emb = bn(emb_raw, p["bn_au1"])
    xp = emb @ p["wp"] + p["bp"]
    au_flat = xp @ p["wlast"]                                  # bug encoded in wlast
    au_inter = xp @ p["wint"] + p["bint"]
    fau = au_flat @ p["wfin"] + p["bfin"]
    exp0 = jnp.maximum(bn(emb, p["bn_exp1"]) @ p["wexp1"] + p["bexp1"], 0.0)
    exp_inter = jnp.concatenate([au_inter, exp0], axis=-1)
    exp_out = bn(exp_inter, p["bn_exp2"]) @ p["wexp2"] + p["bexp2"]
    exp_inter_out = exp_inter @ p["wexpint"] + p["bexpint"]
    va0 = jnp.maximum(bn(emb, p["bn_va1"]) @ p["wva1"] + p["bva1"], 0.0)
    va_inter = jnp.concatenate([exp_inter_out, va0], axis=-1)
    va_out = bn(va_inter, p["bn_va2"]) @ p["wva2"] + p["bva2"]
    return va_out, au_flat, fau, exp_out


def folded_forward(x_flat, w_emb, fp, use_bf16):
    """Replicates the kernel math in plain JAX (folded weights)."""
    def prep(a):
        return a.astype(jnp.bfloat16) if use_bf16 else a

    def dot(a, w):
        return jnp.dot(prep(a), w, preferred_element_type=jnp.float32)

    bias = fp["bias"]
    emb = dot(x_flat, w_emb)
    y1 = dot(emb, fp["W1"]) + bias[0:1, :]
    xp_pad = y1[:, 0:256]
    ev = jnp.maximum(y1[:, 256:384], 0.0)
    y2 = dot(xp_pad, fp["W2"]) + bias[1:2, 0:W2_COLS]
    y3 = dot(ev, fp["W3"])
    out = y2 + y3
    va = out[:, 136:138]
    au_flat = out[:, 0:30]
    fau = out[:, 32:62]
    exp = out[:, 128:135]
    return va, au_flat, fau, exp


# ----------------------------------------------------------------------------
if __name__ == "__main__":
    key = jax.random.PRNGKey(0)
    kx, kemb, kparams = jax.random.split(key, 3)

    # Small NCHW input, like the PyTorch module would receive.
    B, C, H, W = 8, 3, 16, 16
    x = jax.random.normal(kx, (B, C, H, W), dtype=jnp.float32)
    x_flat = x.reshape(B, -1)                                  # (8, 768)

    # Stub embedding weight (external pretrained net not available).
    w_emb = (0.02 * jax.random.normal(kemb, (C * H * W, EMB_DIM))).astype(jnp.float32)

    raw = make_raw_params(kparams)
    folded_f32 = fold_params(raw)
    folded_b16 = cast_folded_bf16(folded_f32)
    w_emb_b16 = w_emb.astype(jnp.bfloat16)
    x_flat_b16 = x_flat.astype(jnp.bfloat16)

    # --- check 1: folding algebra (f32) matches original per-layer math ------
    emb_f32 = x_flat @ w_emb
    va_r, au_r, fau_r, exp_r = reference_forward_original(emb_f32, raw)
    va_f, au_f, fau_f, exp_f = folded_forward(x_flat, w_emb, folded_f32, use_bf16=False)
    for got, ref in ((va_f, va_r), (au_f, au_r), (fau_f, fau_r), (exp_f, exp_r)):
        assert jnp.allclose(got, ref, atol=2e-4, rtol=2e-4), "folding mismatch"

    # --- check 2: Pallas kernel matches the folded bf16 reference ------------
    va, au, fau, exp = jax.block_until_ready(
        multitask_forward(x_flat_b16, w_emb_b16, folded_b16))
    va_k, au_k, fau_k, exp_k = folded_forward(x_flat_b16, w_emb_b16, folded_b16,
                                              use_bf16=True)

    assert va.shape == (B, 2) and au.shape == (B, N_HEADS, 2)
    assert fau.shape == (B, N_HEADS, 2) and exp.shape == (B, 7)
    pairs = ((va, va_k), (au, au_k.reshape(B, N_HEADS, 2)),
             (fau, fau_k.reshape(B, N_HEADS, 2)), (exp, exp_k))
    for got, ref in pairs:
        assert jnp.allclose(got, ref, atol=2e-3, rtol=2e-3), "kernel mismatch"

    print("KERNEL_OK")
</pallas_src>

<mosaic_0001>
module attributes {stable_mosaic.version = 11 : i64} {
  func.func @_multitask_kernel(%arg0: memref<8x768xbf16, #tpu.memory_space<vmem>>, %arg1: memref<768x512xbf16, #tpu.memory_space<vmem>>, %arg2: memref<512x384xbf16, #tpu.memory_space<vmem>>, %arg3: memref<256x256xbf16, #tpu.memory_space<vmem>>, %arg4: memref<128x256xbf16, #tpu.memory_space<vmem>>, %arg5: memref<2x384xf32, #tpu.memory_space<vmem>>, %arg6: memref<8x256xf32, #tpu.memory_space<vmem>>) attributes {dimension_semantics = [], scalar_prefetch = 0 : i64, scratch_operands = 0 : i64, tpu.core_type = #tpu.core_type<tc>} {
    %c0 = arith.constant 0 : index
    %c0_0 = arith.constant 0 : index
    %0 = vector.load %arg0[%c0, %c0_0] : memref<8x768xbf16, #tpu.memory_space<vmem>>, vector<8x768xbf16>
    %c0_1 = arith.constant 0 : index
    %c0_2 = arith.constant 0 : index
    %1 = vector.load %arg1[%c0_1, %c0_2] : memref<768x512xbf16, #tpu.memory_space<vmem>>, vector<768x512xbf16>
    %cst = arith.constant dense<0.000000e+00> : vector<8x512xf32>
    %2 = tpu.matmul %0, %1, %cst {dimension_numbers = #tpu.dot_dimension_numbers<[1], [0], [0], [1], [0, 0, 1, 1], [], []>} : vector<8x768xbf16>, vector<768x512xbf16>, vector<8x512xf32> -> vector<8x512xf32>
    %3 = arith.truncf %2 : vector<8x512xf32> to vector<8x512xbf16>
    %c0_3 = arith.constant 0 : index
    %c0_4 = arith.constant 0 : index
    %4 = vector.load %arg2[%c0_3, %c0_4] : memref<512x384xbf16, #tpu.memory_space<vmem>>, vector<512x384xbf16>
    %cst_5 = arith.constant dense<0.000000e+00> : vector<8x384xf32>
    %5 = tpu.matmul %3, %4, %cst_5 {dimension_numbers = #tpu.dot_dimension_numbers<[1], [0], [0], [1], [0, 0, 1, 1], [], []>} : vector<8x512xbf16>, vector<512x384xbf16>, vector<8x384xf32> -> vector<8x384xf32>
    %c0_6 = arith.constant 0 : index
    %c0_7 = arith.constant 0 : index
    %6 = vector.load %arg5[%c0_6, %c0_7] : memref<2x384xf32, #tpu.memory_space<vmem>>, vector<1x384xf32>
    %7 = vector.broadcast %6 : vector<1x384xf32> to vector<8x384xf32>
    %8 = arith.addf %5, %7 : vector<8x384xf32>
    %9 = vector.extract_strided_slice %8 {offsets = [0, 0], sizes = [8, 256], strides = [1, 1]} : vector<8x384xf32> to vector<8x256xf32>
    %10 = vector.extract_strided_slice %8 {offsets = [0, 256], sizes = [8, 128], strides = [1, 1]} : vector<8x384xf32> to vector<8x128xf32>
    %cst_8 = arith.constant 0.000000e+00 : f32
    %11 = vector.broadcast %cst_8 : f32 to vector<8x128xf32>
    %12 = arith.maximumf %10, %11 : vector<8x128xf32>
    %13 = arith.truncf %9 : vector<8x256xf32> to vector<8x256xbf16>
    %c0_9 = arith.constant 0 : index
    %c0_10 = arith.constant 0 : index
    %14 = vector.load %arg3[%c0_9, %c0_10] : memref<256x256xbf16, #tpu.memory_space<vmem>>, vector<256x256xbf16>
    %cst_11 = arith.constant dense<0.000000e+00> : vector<8x256xf32>
    %15 = tpu.matmul %13, %14, %cst_11 {dimension_numbers = #tpu.dot_dimension_numbers<[1], [0], [0], [1], [0, 0, 1, 1], [], []>} : vector<8x256xbf16>, vector<256x256xbf16>, vector<8x256xf32> -> vector<8x256xf32>
    %c1 = arith.constant 1 : index
    %c0_12 = arith.constant 0 : index
    %16 = vector.load %arg5[%c1, %c0_12] : memref<2x384xf32, #tpu.memory_space<vmem>>, vector<1x256xf32>
    %17 = vector.broadcast %16 : vector<1x256xf32> to vector<8x256xf32>
    %18 = arith.addf %15, %17 : vector<8x256xf32>
    %19 = arith.truncf %12 : vector<8x128xf32> to vector<8x128xbf16>
    %c0_13 = arith.constant 0 : index
    %c0_14 = arith.constant 0 : index
    %20 = vector.load %arg4[%c0_13, %c0_14] : memref<128x256xbf16, #tpu.memory_space<vmem>>, vector<128x256xbf16>
    %cst_15 = arith.constant dense<0.000000e+00> : vector<8x256xf32>
    %21 = tpu.matmul %19, %20, %cst_15 {dimension_numbers = #tpu.dot_dimension_numbers<[1], [0], [0], [1], [0, 0, 1, 1], [], []>} : vector<8x128xbf16>, vector<128x256xbf16>, vector<8x256xf32> -> vector<8x256xf32>
    %22 = arith.addf %18, %21 : vector<8x256xf32>
    %c0_16 = arith.constant 0 : index
    %c0_17 = arith.constant 0 : index
    %23 = vector.load %arg6[%c0_16, %c0_17] : memref<8x256xf32, #tpu.memory_space<vmem>>, vector<8x256xf32>
    tpu.vector_store %arg6[%c0_16, %c0_17], %22 {strides = array<i32>} : memref<8x256xf32, #tpu.memory_space<vmem>>, vector<8x256xf32>,
    return
  }
}

</mosaic_0001>

<bundles_post_ra>
// kernel: multitask_forward.1
= control target key start
LH: loop header
LB: loop body
LE: loop exit
PB: predicated region body
PF: predicated region fallthrough
CT: control target
= control target key end

     0   :  { %11 = vsyncpa [#allocation3], 0  ;;  %s4795_s0 = inlined_call_operand.hbm [shape: bf16[8,768], index: 0, kind: input, shape index: {}]   ;;  %s4796_s1 = inlined_call_operand.hbm [shape: bf16[768,512], index: 1, kind: input, shape index: {}]   ;;  %s4797_s2 = inlined_call_operand.hbm [shape: bf16[512,384], index: 2, kind: input, shape index: {}]   ;;  %s4798_s3 = inlined_call_operand.hbm [shape: bf16[256,256], index: 3, kind: input, shape index: {}]   ;;  %s4799_s4 = inlined_call_operand.hbm [shape: bf16[128,256], index: 4, kind: input, shape index: {}]   ;;  %s4800_s5 = inlined_call_operand.hbm [shape: f32[2,384], index: 5, kind: input, shape index: {}]   ;;  %s4801_s6 = inlined_call_operand.vmem [shape: f32[8,256], index: 6, kind: output, shape index: {}]  }
   0x1   :  { %12 = vsyncpa [#allocation5], 0 }
   0x2   :  { %13 = vsyncpa [#allocation8], 0  ;;  %s30_s23 = sshll.u32 %s4796_s1, 4  ;;  %s31_s23 = int_to_ptr.hbm [resolvable:$true] %s30_s23 }
   0x3   :  { %14 = vsyncpa [#allocation11], 0  ;;  %s4642_s24 = smov [#allocation4]   ;;  %s56_s28 = sshll.u32 %s4798_s3, 4  ;;  %s57_s28 = int_to_ptr.hbm [resolvable:$true] %s56_s28 }
   0x4   :  { %s32_s25 = sshll.u32 %s4642_s24, 4  ;;  %s4643_s29 = smov 256   ;;  %s33_s25 = int_to_ptr.vmem [resolvable:$true] %s32_s25 }
   0x5   :  { %s4644_s30 = smov 16   ;;  %s4645_s7 = smov [#allocation7]  }
   0x6   :  { %38 = dma.hbm_to_vmem [thread:$0]  %s31_s23, 24576, %s33_s25, [#allocation5], %s4643_s29, %s4643_s29, %s4644_s30  }
   0x7   :  { %s58_s8 = sshll.u32 %s4645_s7, 4  ;;  %s4646_s9 = smov 128   ;;  %s59_s8 = int_to_ptr.vmem [resolvable:$true] %s58_s8 }
   0x8   :  { %s4647_s10 = smov 8   ;;  %s20_s12 = sshll.u32 %s4795_s0, 4  ;;  %s21_s12 = int_to_ptr.hbm [resolvable:$true] %s20_s12 }
   0x9   :  { %64 = dma.hbm_to_vmem [thread:$0]  %s57_s28, 4096, %s59_s8, [#allocation8], %s4646_s9, %s4646_s9, %s4647_s10  }
   0xa   :  { %s4648_s13 = smov [#allocation2]   ;;  %s43_s16 = sshll.u32 %s4797_s2, 4  ;;  %s44_s16 = int_to_ptr.hbm [resolvable:$true] %s43_s16 }
   0xb   :  { %s22_s14 = sshll.u32 %s4648_s13, 4  ;;  %s4649_s17 = smov [#allocation6]   ;;  %s23_s14 = int_to_ptr.vmem [resolvable:$true] %s22_s14 }
   0xc   :  { %25 = dma.hbm_to_vmem [thread:$0]  %s21_s12, 384, %s23_s14, [#allocation3]  }
   0xd   :  { %s45_s18 = sshll.u32 %s4649_s17, 4  ;;  %s4650_s19 = smov 192   ;;  %s46_s18 = int_to_ptr.vmem [resolvable:$true] %s45_s18 }
   0xe   :  { %s4651_s20 = smov 12   ;;  %s69_s0 = sshll.u32 %s4799_s4, 4  ;;  %s70_s0 = int_to_ptr.hbm [resolvable:$true] %s69_s0 }
   0xf   :  { %51 = dma.hbm_to_vmem [thread:$0]  %s44_s16, 12288, %s46_s18, [#allocation5], %s4650_s19, %s4650_s19, %s4651_s20  }
  0x10   :  { %s4652_s23 = smov [#allocation9]   ;;  %s83_s2 = sshll.u32 %s4800_s5, 4  ;;  %s84_s2 = int_to_ptr.hbm [resolvable:$true] %s83_s2 }
  0x11   :  { %s71_s24 = sshll.u32 %s4652_s23, 4  ;;  %s4653_s27 = smov [#allocation10]   ;;  %s72_s24 = int_to_ptr.vmem [resolvable:$true] %s71_s24 }
  0x12   :  { %77 = dma.hbm_to_vmem [thread:$0]  %s70_s0, 2048, %s72_s24, [#allocation8], %s4646_s9, %s4646_s9, %s4647_s10  }
  0x13   :  { %s85_s28 = sshll.u32 %s4653_s27, 4  ;;  %s86_s28 = int_to_ptr.vmem [resolvable:$true] %s85_s28 }
  0x14   :  { %88 = dma.hbm_to_vmem [thread:$0]  %s84_s2, 96, %s86_s28, [#allocation11]  }
  0x15   :  { %4634 = dma.done.wait [#allocation3], 384  }
  0x16   :  { %4635 = vsyncadd [#allocation3], 4294966912 }
  0x17   :  { %4636 = dma.done.wait [#allocation5], 36864  }
  0x18   :  { %4637 = vsyncadd [#allocation5], 4294930432 }
  0x19   :  { %4638 = dma.done.wait [#allocation8], 6144  }
  0x1a   :  { %4639 = vsyncadd [#allocation8], 4294961152 }
  0x1b   :  { %4640 = dma.done.wait [#allocation11], 96  }
  0x1c   :  { %4641 = vsyncadd [#allocation11], 4294967200  ;;  %v2912_v0 = vld [vmem:[#allocation4 + $0xe0] sm:$0xf]  ;;  %v4172_v1 = vld [vmem:[#allocation4 + $0xec] sm:$0xf0] }
  0x1d   :  { %v3040_v2 = vld [vmem:[#allocation4 + $0x1e0] sm:$0xf]  ;;  %v2913_v3 = vor.u32 %v4172_v1, %v2912_v0  ;;  %v4204_v4 = vld [vmem:[#allocation4 + $0x1ec] sm:$0xf0] }
  0x1e   :  { %v3168_v5 = vld [vmem:[#allocation4 + $0x2e0] sm:$0xf]  ;;  %v4236_v6 = vld [vmem:[#allocation4 + $0x2ec] sm:$0xf0]  ;;  %v3041_v7 = vor.u32 %v4204_v4, %v3040_v2 }
  0x1f   :  { %v3169_v8 = vor.u32 %v4236_v6, %v3168_v5  ;;  %v3296_v9 = vld [vmem:[#allocation4 + $0x3e0] sm:$0xf]  ;;  %v4268_v10 = vld [vmem:[#allocation4 + $0x3ec] sm:$0xf0]  ;;  %1289 = vmatpush.bf16.msra.mxu0 %v2913_v3 }
  0x20   :  { %v2896_v11 = vld [vmem:[#allocation4 + $0xc0] sm:$0xf]  ;;  %v3297_v12 = vor.u32 %v4268_v10, %v3296_v9  ;;  %v4168_v13 = vld [vmem:[#allocation4 + $0xcc] sm:$0xf0]  ;;  %1302 = vmatpush.bf16.msra.mxu1 %v3041_v7 }
  0x21   :  { %v3024_v14 = vld [vmem:[#allocation4 + $0x1c0] sm:$0xf]  ;;  %v4200_v15 = vld [vmem:[#allocation4 + $0x1cc] sm:$0xf0]  ;;  %1315 = vmatpush.bf16.msra.mxu2 %v3169_v8  ;;  %v2897_v16 = vor.u32 %v4168_v13, %v2896_v11 }
  0x22   :  { %v3025_v17 = vor.u32 %v4200_v15, %v3024_v14  ;;  %v3152_v18 = vld [vmem:[#allocation4 + $0x2c0] sm:$0xf]  ;;  %v4232_v19 = vld [vmem:[#allocation4 + $0x2cc] sm:$0xf0]  ;;  %1328 = vmatpush.bf16.msra.mxu3 %v3297_v12 }
  0x23   :  { %v3280_v20 = vld [vmem:[#allocation4 + $0x3c0] sm:$0xf]  ;;  %v3153_v21 = vor.u32 %v4232_v19, %v3152_v18  ;;  %v4264_v22 = vld [vmem:[#allocation4 + $0x3cc] sm:$0xf0]  ;;  %1290 = vmatpush.bf16.msra.mxu0 %v2897_v16 }
  0x24   :  { %v2880_v23 = vld [vmem:[#allocation4 + $0xa0] sm:$0xf]  ;;  %v4164_v24 = vld [vmem:[#allocation4 + $0xac] sm:$0xf0]  ;;  %v3281_v25 = vor.u32 %v4264_v22, %v3280_v20  ;;  %1303 = vmatpush.bf16.msra.mxu1 %v3025_v17 }
  0x25   :  { %v3008_v26 = vld [vmem:[#allocation4 + $0x1a0] sm:$0xf]  ;;  %v4196_v27 = vld [vmem:[#allocation4 + $0x1ac] sm:$0xf0]  ;;  %v2881_v29 = vor.u32 %v4164_v24, %v2880_v23  ;;  %1316 = vmatpush.bf16.msra.mxu2 %v3153_v21 }
  0x26   :  { %v3136_v28 = vld [vmem:[#allocation4 + $0x2a0] sm:$0xf]  ;;  %v4228_v30 = vld [vmem:[#allocation4 + $0x2ac] sm:$0xf0]  ;;  %v3009_v33 = vor.u32 %v4196_v27, %v3008_v26  ;;  %1329 = vmatpush.bf16.msra.mxu3 %v3281_v25 }
  0x27   :  { %v3264_v31 = vld [vmem:[#allocation4 + $0x3a0] sm:$0xf]  ;;  %v4260_v32 = vld [vmem:[#allocation4 + $0x3ac] sm:$0xf0]  ;;  %v3137_v34 = vor.u32 %v4228_v30, %v3136_v28  ;;  %1291 = vmatpush.bf16.msra.mxu0 %v2881_v29 }
  0x28   :  { %v2864_v35 = vld [vmem:[#allocation4 + $0x80] sm:$0xf]  ;;  %v4160_v36 = vld [vmem:[#allocation4 + $0x8c] sm:$0xf0]  ;;  %v3265_v38 = vor.u32 %v4260_v32, %v3264_v31  ;;  %1304 = vmatpush.bf16.msra.mxu1 %v3009_v33  ;;  %v4170_v33 = vld [vmem:[#allocation4 + $0xe4] sm:$0xf] }
  0x29   :  { %v2992_v37 = vld [vmem:[#allocation4 + $0x180] sm:$0xf]  ;;  %v4192_v39 = vld [vmem:[#allocation4 + $0x18c] sm:$0xf0]  ;;  %v2865_v44 = vor.u32 %v4160_v36, %v2864_v35  ;;  %1317 = vmatpush.bf16.msra.mxu2 %v3137_v34  ;;  %v2914_v34 = vld [vmem:[#allocation4 + $0xf0] sm:$0xf0] }
  0x2a   :  { %v3120_v40 = vld [vmem:[#allocation4 + $0x280] sm:$0xf]  ;;  %v4224_v41 = vld [vmem:[#allocation4 + $0x28c] sm:$0xf0]  ;;  %v2993_v45 = vor.u32 %v4192_v39, %v2992_v37  ;;  %1330 = vmatpush.bf16.msra.mxu3 %v3265_v38  ;;  %v4202_v37 = vld [vmem:[#allocation4 + $0x1e4] sm:$0xf] }
  0x2b   :  { %v3248_v42 = vld [vmem:[#allocation4 + $0x380] sm:$0xf]  ;;  %v4256_v43 = vld [vmem:[#allocation4 + $0x38c] sm:$0xf0]  ;;  %v3121_v46 = vor.u32 %v4224_v41, %v3120_v40  ;;  %1292 = vmatpush.bf16.msra.mxu0 %v2865_v44  ;;  %v3042_v38 = vld [vmem:[#allocation4 + $0x1f0] sm:$0xf0] }
  0x2c   :  { %v2848_v47 = vld [vmem:[#allocation4 + $0x60] sm:$0xf]  ;;  %v4156_v48 = vld [vmem:[#allocation4 + $0x6c] sm:$0xf0]  ;;  %v3249_v50 = vor.u32 %v4256_v43, %v3248_v42  ;;  %1305 = vmatpush.bf16.msra.mxu1 %v2993_v45  ;;  %v2917_v42 = vor.u32 %v4170_v33, %v2914_v34  ;;  %v2978_v33 = vld [vmem:[#allocation4 + $0x170] sm:$0xf0] }
  0x2d   :  { %v2976_v49 = vld [vmem:[#allocation4 + $0x160] sm:$0xf]  ;;  %v4188_v51 = vld [vmem:[#allocation4 + $0x16c] sm:$0xf0]  ;;  %v2849_v56 = vor.u32 %v4156_v48, %v2848_v47  ;;  %1318 = vmatpush.bf16.msra.mxu2 %v3121_v46  ;;  %v3045_v46 = vor.u32 %v4202_v37, %v3042_v38  ;;  %v4166_v48 = vld [vmem:[#allocation4 + $0xc4] sm:$0xf] }
  0x2e   :  { %v3104_v52 = vld [vmem:[#allocation4 + $0x260] sm:$0xf]  ;;  %v4220_v53 = vld [vmem:[#allocation4 + $0x26c] sm:$0xf0]  ;;  %v2977_v57 = vor.u32 %v4188_v51, %v2976_v49  ;;  %1331 = vmatpush.bf16.msra.mxu3 %v3249_v50  ;;  %v2898_v49 = vld [vmem:[#allocation4 + $0xd0] sm:$0xf0] }
  0x2f   :  { %v3232_v54 = vld [vmem:[#allocation4 + $0x360] sm:$0xf]  ;;  %v4252_v55 = vld [vmem:[#allocation4 + $0x36c] sm:$0xf0]  ;;  %v3105_v58 = vor.u32 %v4220_v53, %v3104_v52  ;;  %1293 = vmatpush.bf16.msra.mxu0 %v2849_v56  ;;  %v4198_v50 = vld [vmem:[#allocation4 + $0x1c4] sm:$0xf] }
  0x30   :  { %v2832_v59 = vld [vmem:[#allocation4 + $0x40] sm:$0xf]  ;;  %v4152_v60 = vld [vmem:[#allocation4 + $0x4c] sm:$0xf0]  ;;  %v3233_v62 = vor.u32 %v4252_v55, %v3232_v54  ;;  %1306 = vmatpush.bf16.msra.mxu1 %v2977_v57  ;;  %v3026_v51 = vld [vmem:[#allocation4 + $0x1d0] sm:$0xf0]  ;;  %v2901_v55 = vor.u32 %v4166_v48, %v2898_v49 }
  0x31   :  { %v2960_v61 = vld [vmem:[#allocation4 + $0x140] sm:$0xf]  ;;  %v4184_v63 = vld [vmem:[#allocation4 + $0x14c] sm:$0xf0]  ;;  %v2833_v4 = vor.u32 %v4152_v60, %v2832_v59  ;;  %1319 = vmatpush.bf16.msra.mxu2 %v3105_v58  ;;  %v3029_v59 = vor.u32 %v4198_v50, %v3026_v51  ;;  %v4162_v60 = vld [vmem:[#allocation4 + $0xa4] sm:$0xf] }
  0x32   :  { %v3088_v0 = vld [vmem:[#allocation4 + $0x240] sm:$0xf]  ;;  %v4216_v1 = vld [vmem:[#allocation4 + $0x24c] sm:$0xf0]  ;;  %v2961_v5 = vor.u32 %v4184_v63, %v2960_v61  ;;  %1332 = vmatpush.bf16.msra.mxu3 %v3233_v62  ;;  %v2882_v61 = vld [vmem:[#allocation4 + $0xb0] sm:$0xf0] }
  0x33   :  { %v3216_v2 = vld [vmem:[#allocation4 + $0x340] sm:$0xf]  ;;  %v4248_v3 = vld [vmem:[#allocation4 + $0x34c] sm:$0xf0]  ;;  %v3089_v6 = vor.u32 %v4216_v1, %v3088_v0  ;;  %1294 = vmatpush.bf16.msra.mxu0 %v2833_v4  ;;  %v4194_v62 = vld [vmem:[#allocation4 + $0x1a4] sm:$0xf]  ;;  %v2885_v4 = vor.u32 %v4162_v60, %v2882_v61 }
  0x34   :  { %v2816_v7 = vld [vmem:[#allocation4 + $0x20] sm:$0xf]  ;;  %v4148_v8 = vld [vmem:[#allocation4 + $0x2c] sm:$0xf0]  ;;  %v3217_v10 = vor.u32 %v4248_v3, %v3216_v2  ;;  %1307 = vmatpush.bf16.msra.mxu1 %v2961_v5  ;;  %v3010_v63 = vld [vmem:[#allocation4 + $0x1b0] sm:$0xf0] }
  0x35   :  { %v2944_v9 = vld [vmem:[#allocation4 + $0x120] sm:$0xf]  ;;  %v4180_v11 = vld [vmem:[#allocation4 + $0x12c] sm:$0xf0]  ;;  %v2817_v16 = vor.u32 %v4148_v8, %v2816_v7  ;;  %1320 = vmatpush.bf16.msra.mxu2 %v3089_v6  ;;  %v113_v2 = vld [vmem:[#allocation2] sm:$0xff] }
  0x36   :  { %v3072_v12 = vld [vmem:[#allocation4 + $0x220] sm:$0xf]  ;;  %v4212_v13 = vld [vmem:[#allocation4 + $0x22c] sm:$0xf0]  ;;  %v2945_v19 = vor.u32 %v4180_v11, %v2944_v9  ;;  %1333 = vmatpush.bf16.msra.mxu3 %v3217_v10  ;;  %v311_v8 = vunpack.c.l.b16 %v113_v2  ;;  %v312_v10 = vunpack.c.h.b16 %v113_v2  ;;  %v3013_v11 = vor.u32 %v4194_v62, %v3010_v63  ;;  %v115_v2 = vld [vmem:[#allocation2 + $0x10] sm:$0xff] }
  0x37   :  { %v3200_v14 = vld [vmem:[#allocation4 + $0x320] sm:$0xf]  ;;  %v4244_v15 = vld [vmem:[#allocation4 + $0x32c] sm:$0xf0]  ;;  %v3073_v20 = vor.u32 %v4212_v13, %v3072_v12  ;;  %1295 = vmatpush.bf16.msra.mxu0 %v2817_v16  ;;  %v4158_v13 = vld [vmem:[#allocation4 + $0x84] sm:$0xf] }
  0x38   :  { %v2800_v17 = vld [vmem:[#allocation4] sm:$0xf]  ;;  %v4144_v18 = vld [vmem:[#allocation4 + $0xc] sm:$0xf0]  ;;  %v3201_v24 = vor.u32 %v4244_v15, %v3200_v14  ;;  %1308 = vmatpush.bf16.msra.mxu1 %v2945_v19  ;;  %v2866_v14 = vld [vmem:[#allocation4 + $0x90] sm:$0xf0] }
  0x39   :  { %v2928_v21 = vld [vmem:[#allocation4 + $0x100] sm:$0xf]  ;;  %v4176_v22 = vld [vmem:[#allocation4 + $0x10c] sm:$0xf0]  ;;  %v2801_v31 = vor.u32 %v4144_v18, %v2800_v17  ;;  %1321 = vmatpush.bf16.msra.mxu2 %v3073_v20  ;;  %v4190_v16 = vld [vmem:[#allocation4 + $0x184] sm:$0xf]  ;;  %v4707_v18 = vpack.c.b16 %v311_v8, %v311_v8  ;;  %v4711_v20 = vpack.c.b16 %v312_v10, %v312_v10 }
  0x3a   :  { %v3056_v23 = vld [vmem:[#allocation4 + $0x200] sm:$0xf]  ;;  %v4208_v25 = vld [vmem:[#allocation4 + $0x20c] sm:$0xf0]  ;;  %v2929_v35 = vor.u32 %v4176_v22, %v2928_v21  ;;  %1334 = vmatpush.bf16.msra.mxu3 %v3201_v24  ;;  %v2994_v17 = vld [vmem:[#allocation4 + $0x190] sm:$0xf0]  ;;  %v2869_v24 = vor.u32 %v4158_v13, %v2866_v14  ;;  %v315_v14 = vunpack.c.l.b16 %v115_v2 }
  0x3b   :  { %v3184_v26 = vld [vmem:[#allocation4 + $0x300] sm:$0xf]  ;;  %v4240_v27 = vld [vmem:[#allocation4 + $0x30c] sm:$0xf0]  ;;  %v3057_v36 = vor.u32 %v4208_v25, %v3056_v23  ;;  %1296 = vmatpush.bf16.msra.mxu0 %v2801_v31  ;;  %v2850_v31 = vld [vmem:[#allocation4 + $0x70] sm:$0xf0] }
  0x3c   :  { %v3424_v28 = vld [vmem:[#allocation4 + $0x4e0] sm:$0xf]  ;;  %v4300_v29 = vld [vmem:[#allocation4 + $0x4ec] sm:$0xf0]  ;;  %v3185_v39 = vor.u32 %v4240_v27, %v3184_v26  ;;  %1309 = vmatpush.bf16.msra.mxu1 %v2929_v35  ;;  %v3170_v8 = vld [vmem:[#allocation4 + $0x2f0] sm:$0xf0] }
  0x3d   :  { %v3552_v30 = vld [vmem:[#allocation4 + $0x5e0] sm:$0xf]  ;;  %v4332_v32 = vld [vmem:[#allocation4 + $0x5ec] sm:$0xf0]  ;;  %v3425_v40 = vor.u32 %v4300_v29, %v3424_v28  ;;  %1322 = vmatpush.bf16.msra.mxu2 %v3057_v36  ;;  %v2997_v28 = vor.u32 %v4190_v16, %v2994_v17  ;;  %v3426_v13 = vld [vmem:[#allocation4 + $0x4f0] sm:$0xf0] }
  0x3e   :  { %v3553_v41 = vor.u32 %v4332_v32, %v3552_v30  ;;  %v3408_v43 = vld [vmem:[#allocation4 + $0x4c0] sm:$0xf]  ;;  %v4296_v44 = vld [vmem:[#allocation4 + $0x4cc] sm:$0xf0]  ;;  %1335 = vmatpush.bf16.msra.mxu3 %v3185_v39  ;;  %v4154_v30 = vld [vmem:[#allocation4 + $0x64] sm:$0xf]  ;;  %1297 = vmatmul.bf16.vlgmr.msra.gmra.mxu0 %v4707_v18 }
  0x3f   :  { %v3536_v45 = vld [vmem:[#allocation4 + $0x5c0] sm:$0xf]  ;;  %v4328_v47 = vld [vmem:[#allocation4 + $0x5cc] sm:$0xf0]  ;;  %1341 = vmatpush.bf16.msrb.mxu0 %v3425_v40  ;;  %v3409_v52 = vor.u32 %v4296_v44, %v3408_v43  ;;  %v4186_v32 = vld [vmem:[#allocation4 + $0x164] sm:$0xf]  ;;  %1310 = vmatmul.bf16.vlgmr.msra.gmra.mxu1 %v4711_v20  ;;  %v2853_v36 = vor.u32 %v4154_v30, %v2850_v31 }
  0x40   :  { %v3392_v53 = vld [vmem:[#allocation4 + $0x4a0] sm:$0xf]  ;;  %1354 = vmatpush.bf16.msrb.mxu1 %v3553_v41  ;;  %v3537_v54 = vor.u32 %v4328_v47, %v3536_v45  ;;  %v4292_v56 = vld [vmem:[#allocation4 + $0x4ac] sm:$0xf0]  ;;  %v2981_v40 = vor.u32 %v4186_v32, %v2978_v33  ;;  %v2834_v43 = vld [vmem:[#allocation4 + $0x50] sm:$0xf0] }
  0x41   :  { %1367 = vmatpush.bf16.msrb.mxu2 %v2917_v42  ;;  %v3520_v57 = vld [vmem:[#allocation4 + $0x5a0] sm:$0xf]  ;;  %v4324_v58 = vld [vmem:[#allocation4 + $0x5ac] sm:$0xf0]  ;;  %v3393_v0 = vor.u32 %v4292_v56, %v3392_v53  ;;  %v4150_v42 = vld [vmem:[#allocation4 + $0x44] sm:$0xf] }
  0x42   :  { %1380 = vmatpush.bf16.msrb.mxu3 %v3045_v46  ;;  %v3521_v1 = vor.u32 %v4324_v58, %v3520_v57  ;;  %v114_v3 = vld [vmem:[#allocation2 + $0x8] sm:$0xff]  ;;  %v3376_v5 = vld [vmem:[#allocation4 + $0x480] sm:$0xf]  ;;  %v4182_v44 = vld [vmem:[#allocation4 + $0x144] sm:$0xf]  ;;  %v2837_v48 = vor.u32 %v4150_v42, %v2834_v43 }
  0x43   :  { %1342 = vmatpush.bf16.msrb.mxu0 %v3409_v52  ;;  %v4288_v6 = vld [vmem:[#allocation4 + $0x48c] sm:$0xf0]  ;;  %v3504_v7 = vld [vmem:[#allocation4 + $0x580] sm:$0xf]  ;;  %v313_v9 = vunpack.c.l.b16 %v114_v3  ;;  %v314_v15 = vunpack.c.h.b16 %v114_v3  ;;  %v2962_v45 = vld [vmem:[#allocation4 + $0x150] sm:$0xf0] }
  0x44   :  { %1355 = vmatpush.bf16.msrb.mxu1 %v3537_v54  ;;  %v4320_v12 = vld [vmem:[#allocation4 + $0x58c] sm:$0xf0]  ;;  %v3377_v21 = vor.u32 %v4288_v6, %v3376_v5  ;;  %v3360_v25 = vld [vmem:[#allocation4 + $0x460] sm:$0xf]  ;;  %v2965_v52 = vor.u32 %v4182_v44, %v2962_v45  ;;  %v4146_v54 = vld [vmem:[#allocation4 + $0x24] sm:$0xf] }
  0x45   :  { %1368 = vmatpush.bf16.msrb.mxu2 %v2901_v55  ;;  %v4709_v19 = vpack.c.b16 %v313_v9, %v313_v9  ;;  %v4713_v22 = vpack.c.b16 %v314_v15, %v314_v15  ;;  %v3505_v23 = vor.u32 %v4320_v12, %v3504_v7  ;;  %v4284_v26 = vld [vmem:[#allocation4 + $0x46c] sm:$0xf0]  ;;  %v3488_v27 = vld [vmem:[#allocation4 + $0x560] sm:$0xf]  ;;  %v2818_v55 = vld [vmem:[#allocation4 + $0x30] sm:$0xf0] }
  0x46   :  { %1381 = vmatpush.bf16.msrb.mxu3 %v3029_v59  ;;  %v4316_v29 = vld [vmem:[#allocation4 + $0x56c] sm:$0xf0]  ;;  %v3361_v34 = vor.u32 %v4284_v26, %v3360_v25  ;;  %v3344_v37 = vld [vmem:[#allocation4 + $0x440] sm:$0xf]  ;;  %v4178_v56 = vld [vmem:[#allocation4 + $0x124] sm:$0xf]  ;;  %v2821_v63 = vor.u32 %v4146_v54, %v2818_v55 }
  0x47   :  { %1343 = vmatpush.bf16.msrb.mxu0 %v3393_v0  ;;  %1323 = vmatmul.bf16.vlgmr.msra.gmra.mxu2 %v4709_v19  ;;  %v3489_v35 = vor.u32 %v4316_v29, %v3488_v27  ;;  %v4280_v38 = vld [vmem:[#allocation4 + $0x44c] sm:$0xf0]  ;;  %v3472_v39 = vld [vmem:[#allocation4 + $0x540] sm:$0xf]  ;;  %v2946_v57 = vld [vmem:[#allocation4 + $0x130] sm:$0xf0] }
  0x48   :  { %1356 = vmatpush.bf16.msrb.mxu1 %v3521_v1  ;;  %1336 = vmatmul.bf16.vlgmr.msra.gmra.mxu3 %v4713_v22  ;;  %v4312_v41 = vld [vmem:[#allocation4 + $0x54c] sm:$0xf0]  ;;  %v3345_v46 = vor.u32 %v4280_v38, %v3344_v37  ;;  %v3328_v49 = vld [vmem:[#allocation4 + $0x420] sm:$0xf]  ;;  %v4142_v1 = vld [vmem:[#allocation4 + $0x4] sm:$0xf]  ;;  %v2949_v3 = vor.u32 %v4178_v56, %v2946_v57 }
  0x49   :  { %1369 = vmatpush.bf16.msrb.mxu2 %v2885_v4  ;;  %v3473_v47 = vor.u32 %v4312_v41, %v3472_v39  ;;  %v4276_v50 = vld [vmem:[#allocation4 + $0x42c] sm:$0xf0]  ;;  %v3456_v51 = vld [vmem:[#allocation4 + $0x520] sm:$0xf]  ;;  %v2802_v4 = vld [vmem:[#allocation4 + $0x10] sm:$0xf0] }
  0x4a   :  { %1382 = vmatpush.bf16.msrb.mxu3 %v3013_v11  ;;  %v4308_v53 = vld [vmem:[#allocation4 + $0x52c] sm:$0xf0]  ;;  %v3329_v58 = vor.u32 %v4276_v50, %v3328_v49  ;;  %v3312_v59 = vld [vmem:[#allocation4 + $0x400] sm:$0xf]  ;;  %v4174_v5 = vld [vmem:[#allocation4 + $0x104] sm:$0xf]  ;;  %v2805_v16 = vor.u32 %v4142_v1, %v2802_v4 }
  0x4b   :  { %1344 = vmatpush.bf16.msrb.mxu0 %v3377_v21  ;;  %v4272_v60 = vld [vmem:[#allocation4 + $0x40c] sm:$0xf0]  ;;  %v3440_v61 = vld [vmem:[#allocation4 + $0x500] sm:$0xf]  ;;  %v3457_v62 = vor.u32 %v4308_v53, %v3456_v51  ;;  %v2930_v6 = vld [vmem:[#allocation4 + $0x110] sm:$0xf0] }
  0x4c   :  { %1357 = vmatpush.bf16.msrb.mxu1 %v3505_v23  ;;  %v4304_v0 = vld [vmem:[#allocation4 + $0x50c] sm:$0xf0]  ;;  %v4234_v7 = vld [vmem:[#allocation4 + $0x2e4] sm:$0xf]  ;;  %v3313_v10 = vor.u32 %v4272_v60, %v3312_v59  ;;  %v3298_v11 = vld [vmem:[#allocation4 + $0x3f0] sm:$0xf0]  ;;  %v316_v23 = vunpack.c.h.b16 %v115_v2 }
  0x4d   :  { %1370 = vmatpush.bf16.msrb.mxu2 %v2869_v24  ;;  %v4266_v9 = vld [vmem:[#allocation4 + $0x3e4] sm:$0xf]  ;;  %v3441_v15 = vor.u32 %v4304_v0, %v3440_v61  ;;  %v3554_v21 = vld [vmem:[#allocation4 + $0x5f0] sm:$0xf0]  ;;  %v2933_v24 = vor.u32 %v4174_v5, %v2930_v6  ;;  %v3173_v25 = vor.u32 %v4234_v7, %v3170_v8 }
  0x4e   :  { %1383 = vmatpush.bf16.msrb.mxu3 %v2997_v28  ;;  %v4298_v12 = vld [vmem:[#allocation4 + $0x4e4] sm:$0xf]  ;;  %v3301_v26 = vor.u32 %v4266_v9, %v3298_v11  ;;  %v3154_v29 = vld [vmem:[#allocation4 + $0x2d0] sm:$0xf0]  ;;  %v4721_v38 = vpack.c.b16 %v316_v23, %v316_v23 }
  0x4f   :  { %1345 = vmatpush.bf16.msrb.mxu0 %v3361_v34  ;;  %v4330_v17 = vld [vmem:[#allocation4 + $0x5e4] sm:$0xf]  ;;  %v3429_v27 = vor.u32 %v4298_v12, %v3426_v13  ;;  %v3282_v32 = vld [vmem:[#allocation4 + $0x3d0] sm:$0xf0] }
  0x50   :  { %1358 = vmatpush.bf16.msrb.mxu1 %v3489_v35  ;;  %v4230_v28 = vld [vmem:[#allocation4 + $0x2c4] sm:$0xf]  ;;  %v3557_v31 = vor.u32 %v4330_v17, %v3554_v21  ;;  %v3410_v34 = vld [vmem:[#allocation4 + $0x4d0] sm:$0xf0]  ;;  %v4719_v35 = vpack.c.b16 %v315_v14, %v315_v14 }
  0x51   :  { %1371 = vmatpush.bf16.msrb.mxu2 %v2853_v36  ;;  %v4262_v30 = vld [vmem:[#allocation4 + $0x3c4] sm:$0xf]  ;;  %v3538_v37 = vld [vmem:[#allocation4 + $0x5d0] sm:$0xf0]  ;;  %v3157_v39 = vor.u32 %v4230_v28, %v3154_v29 }
  0x52   :  { %1384 = vmatpush.bf16.msrb.mxu3 %v2981_v40  ;;  %v4294_v33 = vld [vmem:[#allocation4 + $0x4c4] sm:$0xf]  ;;  %v3285_v40 = vor.u32 %v4262_v30, %v3282_v32  ;;  %v3138_v43 = vld [vmem:[#allocation4 + $0x2b0] sm:$0xf0] }
  0x53   :  { %1346 = vmatpush.bf16.msrb.mxu0 %v3345_v46  ;;  %v4326_v36 = vld [vmem:[#allocation4 + $0x5c4] sm:$0xf]  ;;  %v3413_v41 = vor.u32 %v4294_v33, %v3410_v34  ;;  %v3266_v46 = vld [vmem:[#allocation4 + $0x3b0] sm:$0xf0] }
  0x54   :  { %1359 = vmatpush.bf16.msrb.mxu1 %v3473_v47  ;;  %v4226_v42 = vld [vmem:[#allocation4 + $0x2a4] sm:$0xf]  ;;  %v3541_v45 = vor.u32 %v4326_v36, %v3538_v37  ;;  %v3522_v50 = vld [vmem:[#allocation4 + $0x5b0] sm:$0xf0] }
  0x55   :  { %1372 = vmatpush.bf16.msrb.mxu2 %v2837_v48  ;;  %v4258_v44 = vld [vmem:[#allocation4 + $0x3a4] sm:$0xf]  ;;  %v3394_v48 = vld [vmem:[#allocation4 + $0x4b0] sm:$0xf0]  ;;  %v3141_v51 = vor.u32 %v4226_v42, %v3138_v43 }
  0x56   :  { %1385 = vmatpush.bf16.msrb.mxu3 %v2965_v52  ;;  %v4290_v47 = vld [vmem:[#allocation4 + $0x4a4] sm:$0xf]  ;;  %v3269_v52 = vor.u32 %v4258_v44, %v3266_v46  ;;  %v3122_v55 = vld [vmem:[#allocation4 + $0x290] sm:$0xf0] }
  0x57   :  { %1347 = vmatpush.bf16.msrb.mxu0 %v3329_v58  ;;  %v4322_v49 = vld [vmem:[#allocation4 + $0x5a4] sm:$0xf]  ;;  %v3397_v53 = vor.u32 %v4290_v47, %v3394_v48  ;;  %v3250_v58 = vld [vmem:[#allocation4 + $0x390] sm:$0xf0] }
  0x58   :  { %1360 = vmatpush.bf16.msrb.mxu1 %v3457_v62  ;;  %v4222_v54 = vld [vmem:[#allocation4 + $0x284] sm:$0xf]  ;;  %v3525_v57 = vor.u32 %v4322_v49, %v3522_v50  ;;  %v3378_v60 = vld [vmem:[#allocation4 + $0x490] sm:$0xf0] }
  0x59   :  { %1373 = vmatpush.bf16.msrb.mxu2 %v2821_v63  ;;  %v4254_v56 = vld [vmem:[#allocation4 + $0x384] sm:$0xf]  ;;  %v3506_v62 = vld [vmem:[#allocation4 + $0x590] sm:$0xf0]  ;;  %v3125_v63 = vor.u32 %v4222_v54, %v3122_v55  ;;  %v4173_v54 = vld [vmem:[#allocation4 + $0xf4] sm:$0xf0] }
  0x5a   :  { %1386 = vmatpush.bf16.msrb.mxu3 %v2949_v3  ;;  %v4286_v59 = vld [vmem:[#allocation4 + $0x484] sm:$0xf]  ;;  %v3253_v0 = vor.u32 %v4254_v56, %v3250_v58  ;;  %v3106_v3 = vld [vmem:[#allocation4 + $0x270] sm:$0xf0]  ;;  %v3048_v55 = vld [vmem:[#allocation4 + $0x1e8] sm:$0xf] }
  0x5b   :  { %1348 = vmatpush.bf16.msrb.mxu0 %v3313_v10  ;;  %v4318_v61 = vld [vmem:[#allocation4 + $0x584] sm:$0xf]  ;;  %v3381_v1 = vor.u32 %v4286_v59, %v3378_v60  ;;  %v3234_v6 = vld [vmem:[#allocation4 + $0x370] sm:$0xf0]  ;;  %v3176_v58 = vld [vmem:[#allocation4 + $0x2e8] sm:$0xf] }
  0x5c   :  { %1361 = vmatpush.bf16.msrb.mxu1 %v3441_v15  ;;  %v4218_v2 = vld [vmem:[#allocation4 + $0x264] sm:$0xf]  ;;  %v3509_v5 = vor.u32 %v4318_v61, %v3506_v62  ;;  %v3362_v8 = vld [vmem:[#allocation4 + $0x470] sm:$0xf0]  ;;  %v4237_v59 = vld [vmem:[#allocation4 + $0x2f4] sm:$0xf0] }
  0x5d   :  { %1374 = vmatpush.bf16.msrb.mxu2 %v2805_v16  ;;  %v4250_v4 = vld [vmem:[#allocation4 + $0x364] sm:$0xf]  ;;  %v3490_v10 = vld [vmem:[#allocation4 + $0x570] sm:$0xf0]  ;;  %v3109_v11 = vor.u32 %v4218_v2, %v3106_v3  ;;  %v3304_v62 = vld [vmem:[#allocation4 + $0x3e8] sm:$0xf]  ;;  %v3177_v3 = vor.u32 %v4237_v59, %v3176_v58 }
  0x5e   :  { %1387 = vmatpush.bf16.msrb.mxu3 %v2933_v24  ;;  %1349 = vmatmul.bf16.vlgmr.msrb.gmra.mxu0 %v4719_v35  ;;  %v4282_v7 = vld [vmem:[#allocation4 + $0x464] sm:$0xf]  ;;  %v3237_v12 = vor.u32 %v4250_v4, %v3234_v6  ;;  %v3090_v15 = vld [vmem:[#allocation4 + $0x250] sm:$0xf0]  ;;  %v2904_v4 = vld [vmem:[#allocation4 + $0xc8] sm:$0xf] }
  0x5f   :  { %1393 = vmatpush.bf16.msra.mxu0 %v3173_v25  ;;  %1362 = vmatmul.bf16.vlgmr.msrb.gmra.mxu1 %v4721_v38  ;;  %v4314_v9 = vld [vmem:[#allocation4 + $0x564] sm:$0xf]  ;;  %v3365_v13 = vor.u32 %v4282_v7, %v3362_v8  ;;  %v3218_v21 = vld [vmem:[#allocation4 + $0x350] sm:$0xf0]  ;;  %v3032_v6 = vld [vmem:[#allocation4 + $0x1c8] sm:$0xf] }
  0x60   :  { %1406 = vmatpush.bf16.msra.mxu1 %v3301_v26  ;;  %1375 = vmatmul.bf16.vlgmr.msrb.gmra.mxu2 %v4707_v18  ;;  %v4214_v14 = vld [vmem:[#allocation4 + $0x244] sm:$0xf]  ;;  %v3493_v17 = vor.u32 %v4314_v9, %v3490_v10  ;;  %v3346_v24 = vld [vmem:[#allocation4 + $0x450] sm:$0xf0]  ;;  %v4201_v8 = vld [vmem:[#allocation4 + $0x1d4] sm:$0xf0] }
  0x61   :  { %1419 = vmatpush.bf16.msra.mxu2 %v3429_v27  ;;  %1388 = vmatmul.bf16.vlgmr.msrb.gmra.mxu3 %v4711_v20  ;;  %v4246_v16 = vld [vmem:[#allocation4 + $0x344] sm:$0xf]  ;;  %v3474_v26 = vld [vmem:[#allocation4 + $0x550] sm:$0xf0]  ;;  %v3093_v27 = vor.u32 %v4214_v14, %v3090_v15  ;;  %v3160_v9 = vld [vmem:[#allocation4 + $0x2c8] sm:$0xf]  ;;  %v3033_v14 = vor.u32 %v4201_v8, %v3032_v6 }
  0x62   :  { %1432 = vmatpush.bf16.msra.mxu3 %v3557_v31  ;;  %v4278_v23 = vld [vmem:[#allocation4 + $0x444] sm:$0xf]  ;;  %v3221_v28 = vor.u32 %v4246_v16, %v3218_v21  ;;  %v3074_v31 = vld [vmem:[#allocation4 + $0x230] sm:$0xf0]  ;;  %v4233_v10 = vld [vmem:[#allocation4 + $0x2d4] sm:$0xf0] }
  0x63   :  { %1394 = vmatpush.bf16.msra.mxu0 %v3157_v39  ;;  %v4310_v25 = vld [vmem:[#allocation4 + $0x544] sm:$0xf]  ;;  %v3349_v29 = vor.u32 %v4278_v23, %v3346_v24  ;;  %v3202_v34 = vld [vmem:[#allocation4 + $0x330] sm:$0xf0]  ;;  %v3161_v15 = vor.u32 %v4233_v10, %v3160_v9  ;;  %v2888_v16 = vld [vmem:[#allocation4 + $0xa8] sm:$0xf] }
  0x64   :  { %1407 = vmatpush.bf16.msra.mxu1 %v3285_v40  ;;  %v4210_v30 = vld [vmem:[#allocation4 + $0x224] sm:$0xf]  ;;  %v3477_v33 = vor.u32 %v4310_v25, %v3474_v26  ;;  %v3330_v37 = vld [vmem:[#allocation4 + $0x430] sm:$0xf0]  ;;  %v3016_v21 = vld [vmem:[#allocation4 + $0x1a8] sm:$0xf] }
  0x65   :  { %1420 = vmatpush.bf16.msra.mxu2 %v3413_v41  ;;  %v4242_v32 = vld [vmem:[#allocation4 + $0x324] sm:$0xf]  ;;  %v3458_v40 = vld [vmem:[#allocation4 + $0x530] sm:$0xf0]  ;;  %v3077_v41 = vor.u32 %v4210_v30, %v3074_v31  ;;  %v4197_v24 = vld [vmem:[#allocation4 + $0x1b4] sm:$0xf0] }
  0x66   :  { %1433 = vmatpush.bf16.msra.mxu3 %v3541_v45  ;;  %v4274_v36 = vld [vmem:[#allocation4 + $0x424] sm:$0xf]  ;;  %v3058_v43 = vld [vmem:[#allocation4 + $0x210] sm:$0xf0]  ;;  %v3205_v44 = vor.u32 %v4242_v32, %v3202_v34  ;;  %v3144_v25 = vld [vmem:[#allocation4 + $0x2a8] sm:$0xf]  ;;  %v3017_v30 = vor.u32 %v4197_v24, %v3016_v21 }
  0x67   :  { %1395 = vmatpush.bf16.msra.mxu0 %v3141_v51  ;;  %v4306_v39 = vld [vmem:[#allocation4 + $0x524] sm:$0xf]  ;;  %v3333_v45 = vor.u32 %v4274_v36, %v3330_v37  ;;  %v3186_v47 = vld [vmem:[#allocation4 + $0x310] sm:$0xf0]  ;;  %v4229_v26 = vld [vmem:[#allocation4 + $0x2b4] sm:$0xf0] }
  0x68   :  { %1408 = vmatpush.bf16.msra.mxu1 %v3269_v52  ;;  %v4206_v42 = vld [vmem:[#allocation4 + $0x204] sm:$0xf]  ;;  %v3461_v49 = vor.u32 %v4306_v39, %v3458_v40  ;;  %v3314_v50 = vld [vmem:[#allocation4 + $0x410] sm:$0xf0]  ;;  %v3145_v31 = vor.u32 %v4229_v26, %v3144_v25  ;;  %v2872_v32 = vld [vmem:[#allocation4 + $0x88] sm:$0xf] }
  0x69   :  { %1421 = vmatpush.bf16.msra.mxu2 %v3397_v53  ;;  %v4238_v46 = vld [vmem:[#allocation4 + $0x304] sm:$0xf]  ;;  %v3442_v52 = vld [vmem:[#allocation4 + $0x510] sm:$0xf0]  ;;  %v2920_v53 = vld [vmem:[#allocation4 + $0xe8] sm:$0xf]  ;;  %v3061_v56 = vor.u32 %v4206_v42, %v3058_v43 }
  0x6a   :  { %1434 = vmatpush.bf16.msra.mxu3 %v3525_v57  ;;  %v4270_v48 = vld [vmem:[#allocation4 + $0x404] sm:$0xf]  ;;  %v4205_v57 = vld [vmem:[#allocation4 + $0x1f4] sm:$0xf0]  ;;  %v3189_v60 = vor.u32 %v4238_v46, %v3186_v47  ;;  %v3000_v34 = vld [vmem:[#allocation4 + $0x188] sm:$0xf] }
  0x6b   :  { %1396 = vmatpush.bf16.msra.mxu0 %v3125_v63  ;;  %v4302_v51 = vld [vmem:[#allocation4 + $0x504] sm:$0xf]  ;;  %v3317_v61 = vor.u32 %v4270_v48, %v3314_v50  ;;  %v4269_v63 = vld [vmem:[#allocation4 + $0x3f4] sm:$0xf0]  ;;  %v3049_v2 = vor.u32 %v4205_v57, %v3048_v55  ;;  %v3128_v39 = vld [vmem:[#allocation4 + $0x288] sm:$0xf] }
  0x6c   :  { %1409 = vmatpush.bf16.msra.mxu1 %v3253_v0  ;;  %v3445_v0 = vor.u32 %v4302_v51, %v3442_v52  ;;  %v3305_v7 = vor.u32 %v4269_v63, %v3304_v62  ;;  %v4193_v37 = vld [vmem:[#allocation4 + $0x194] sm:$0xf0]  ;;  %v2856_v46 = vld [vmem:[#allocation4 + $0x68] sm:$0xf] }
  0x6d   :  { %1422 = vmatpush.bf16.msra.mxu2 %v3381_v1  ;;  %v2921_v1 = vor.u32 %v4173_v54, %v2920_v53  ;;  %v4225_v40 = vld [vmem:[#allocation4 + $0x294] sm:$0xf0]  ;;  %v2984_v48 = vld [vmem:[#allocation4 + $0x168] sm:$0xf] }
  0x6e   :  { %1435 = vmatpush.bf16.msra.mxu3 %v3509_v5  ;;  %v4169_v5 = vld [vmem:[#allocation4 + $0xd4] sm:$0xf0]  ;;  %v3112_v51 = vld [vmem:[#allocation4 + $0x268] sm:$0xf] }
  0x6f   :  { %1397 = vmatpush.bf16.msra.mxu0 %v3109_v11  ;;  %v3288_v11 = vld [vmem:[#allocation4 + $0x3c8] sm:$0xf]  ;;  %v4257_v42 = vld [vmem:[#allocation4 + $0x394] sm:$0xf0] }
  0x70   :  { %1410 = vmatpush.bf16.msra.mxu1 %v3237_v12  ;;  %v4265_v12 = vld [vmem:[#allocation4 + $0x3d4] sm:$0xf0]  ;;  %v3240_v53 = vld [vmem:[#allocation4 + $0x368] sm:$0xf] }
  0x71   :  { %1423 = vmatpush.bf16.msra.mxu2 %v3365_v13  ;;  %v2905_v13 = vor.u32 %v4169_v5, %v2904_v4  ;;  %v3289_v23 = vor.u32 %v4265_v12, %v3288_v11  ;;  %v4157_v47 = vld [vmem:[#allocation4 + $0x74] sm:$0xf0]  ;;  %v2840_v58 = vld [vmem:[#allocation4 + $0x48] sm:$0xf] }
  0x72   :  { %1436 = vmatpush.bf16.msra.mxu3 %v3493_v17  ;;  %v4165_v17 = vld [vmem:[#allocation4 + $0xb4] sm:$0xf0]  ;;  %v2857_v55 = vor.u32 %v4157_v47, %v2856_v46  ;;  %v3096_v63 = vld [vmem:[#allocation4 + $0x248] sm:$0xf] }
  0x73   :  { %1398 = vmatpush.bf16.msra.mxu0 %v3093_v27  ;;  %v3272_v27 = vld [vmem:[#allocation4 + $0x3a8] sm:$0xf]  ;;  %v4189_v50 = vld [vmem:[#allocation4 + $0x174] sm:$0xf0] }
  0x74   :  { %1411 = vmatpush.bf16.msra.mxu1 %v3221_v28  ;;  %v4261_v28 = vld [vmem:[#allocation4 + $0x3b4] sm:$0xf0]  ;;  %v2824_v6 = vld [vmem:[#allocation4 + $0x28] sm:$0xf] }
  0x75   :  { %1424 = vmatpush.bf16.msra.mxu2 %v3349_v29  ;;  %v2889_v29 = vor.u32 %v4165_v17, %v2888_v16  ;;  %v3273_v36 = vor.u32 %v4261_v28, %v3272_v27  ;;  %v4221_v52 = vld [vmem:[#allocation4 + $0x274] sm:$0xf0]  ;;  %v2952_v8 = vld [vmem:[#allocation4 + $0x128] sm:$0xf] }
  0x76   :  { %1437 = vmatpush.bf16.msra.mxu3 %v3477_v33  ;;  %v4161_v33 = vld [vmem:[#allocation4 + $0x94] sm:$0xf0]  ;;  %v3113_v57 = vor.u32 %v4221_v52, %v3112_v51  ;;  %v3080_v11 = vld [vmem:[#allocation4 + $0x228] sm:$0xf] }
  0x77   :  { %1399 = vmatpush.bf16.msra.mxu0 %v3077_v41  ;;  %v3256_v41 = vld [vmem:[#allocation4 + $0x388] sm:$0xf]  ;;  %v2873_v43 = vor.u32 %v4161_v33, %v2872_v32  ;;  %v4253_v54 = vld [vmem:[#allocation4 + $0x374] sm:$0xf0] }
  0x78   :  { %1412 = vmatpush.bf16.msra.mxu1 %v3205_v44  ;;  %v3001_v44 = vor.u32 %v4193_v37, %v3000_v34  ;;  %v4153_v59 = vld [vmem:[#allocation4 + $0x54] sm:$0xf0]  ;;  %v2808_v16 = vld [vmem:[#allocation4 + $0x8] sm:$0xf]  ;;  %v4171_v37 = vld [vmem:[#allocation4 + $0xec] sm:$0xf] }
  0x79   :  { %1425 = vmatpush.bf16.msra.mxu2 %v3333_v45  ;;  %v3129_v45 = vor.u32 %v4225_v40, %v3128_v39  ;;  %v4185_v62 = vld [vmem:[#allocation4 + $0x154] sm:$0xf0]  ;;  %v2936_v24 = vld [vmem:[#allocation4 + $0x108] sm:$0xf]  ;;  %v2922_v39 = vld [vmem:[#allocation4 + $0xf8] sm:$0xf0] }
  0x7a   :  { %1438 = vmatpush.bf16.msra.mxu3 %v3461_v49  ;;  %v3257_v49 = vor.u32 %v4257_v42, %v3256_v41  ;;  %v4181_v10 = vld [vmem:[#allocation4 + $0x134] sm:$0xf0]  ;;  %v3064_v26 = vld [vmem:[#allocation4 + $0x208] sm:$0xf]  ;;  %v4203_v42 = vld [vmem:[#allocation4 + $0x1ec] sm:$0xf]  ;;  %v2925_v47 = vor.u32 %v4171_v37, %v2922_v39 }
  0x7b   :  { %1400 = vmatpush.bf16.msra.mxu0 %v3061_v56  ;;  %v2985_v56 = vor.u32 %v4189_v50, %v2984_v48  ;;  %v4213_v12 = vld [vmem:[#allocation4 + $0x234] sm:$0xf0]  ;;  %v2953_v21 = vor.u32 %v4181_v10, %v2952_v8  ;;  %v3560_v33 = vld [vmem:[#allocation4 + $0x5e8] sm:$0xf] }
  0x7c   :  { %1413 = vmatpush.bf16.msra.mxu1 %v3189_v60  ;;  %v2968_v60 = vld [vmem:[#allocation4 + $0x148] sm:$0xf]  ;;  %v4145_v17 = vld [vmem:[#allocation4 + $0x14] sm:$0xf0] }
  0x7d   :  { %1426 = vmatpush.bf16.msra.mxu2 %v3317_v61  ;;  %v3241_v61 = vor.u32 %v4253_v54, %v3240_v53  ;;  %v2969_v4 = vor.u32 %v4185_v62, %v2968_v60  ;;  %v4177_v25 = vld [vmem:[#allocation4 + $0x114] sm:$0xf0]  ;;  %v2809_v34 = vor.u32 %v4145_v17, %v2808_v16  ;;  %v3416_v48 = vld [vmem:[#allocation4 + $0x4c8] sm:$0xf]  ;;  %v4167_v53 = vld [vmem:[#allocation4 + $0xcc] sm:$0xf] }
  0x7e   :  { %1439 = vmatpush.bf16.msra.mxu3 %v3445_v0  ;;  %1401 = vmatmul.bf16.vlgmr.msra.gmra.mxu0 %v4709_v19  ;;  %v4217_v0 = vld [vmem:[#allocation4 + $0x254] sm:$0xf0]  ;;  %v2937_v40 = vor.u32 %v4177_v25, %v2936_v24  ;;  %v3544_v50 = vld [vmem:[#allocation4 + $0x5c8] sm:$0xf]  ;;  %v2906_v54 = vld [vmem:[#allocation4 + $0xd8] sm:$0xf0] }
  0x7f   :  { %1445 = vmatpush.bf16.msrb.mxu0 %v2921_v1  ;;  %1414 = vmatmul.bf16.vlgmr.msra.gmra.mxu1 %v4713_v22  ;;  %v3224_v1 = vld [vmem:[#allocation4 + $0x348] sm:$0xf]  ;;  %v3097_v5 = vor.u32 %v4217_v0, %v3096_v63  ;;  %v4209_v28 = vld [vmem:[#allocation4 + $0x214] sm:$0xf0]  ;;  %v3002_v16 = vld [vmem:[#allocation4 + $0x198] sm:$0xf0] }
  0x80   :  { %1458 = vmatpush.bf16.msrb.mxu1 %v3049_v2  ;;  %1427 = vmatmul.bf16.vlgmr.msra.gmra.mxu2 %v4719_v35  ;;  %v4249_v2 = vld [vmem:[#allocation4 + $0x354] sm:$0xf0]  ;;  %v3065_v41 = vor.u32 %v4209_v28, %v3064_v26  ;;  %v3400_v60 = vld [vmem:[#allocation4 + $0x4a8] sm:$0xf] }
  0x81   :  { %1471 = vmatpush.bf16.msrb.mxu2 %v3177_v3  ;;  %1440 = vmatmul.bf16.vlgmr.msra.gmra.mxu3 %v4721_v38  ;;  %v2841_v3 = vor.u32 %v4153_v59, %v2840_v58  ;;  %v3225_v9 = vor.u32 %v4249_v2, %v3224_v1  ;;  %v4301_v32 = vld [vmem:[#allocation4 + $0x4f4] sm:$0xf0]  ;;  %v2909_v59 = vor.u32 %v4167_v53, %v2906_v54  ;;  %v3528_v62 = vld [vmem:[#allocation4 + $0x5a8] sm:$0xf]  ;;  %v4163_v1 = vld [vmem:[#allocation4 + $0xac] sm:$0xf] }
  0x82   :  { %1484 = vmatpush.bf16.msrb.mxu3 %v3305_v7  ;;  %v4149_v7 = vld [vmem:[#allocation4 + $0x34] sm:$0xf0]  ;;  %v2890_v2 = vld [vmem:[#allocation4 + $0xb8] sm:$0xf0]  ;;  %v3384_v8 = vld [vmem:[#allocation4 + $0x488] sm:$0xf] }
  0x83   :  { %1446 = vmatpush.bf16.msrb.mxu0 %v2905_v13  ;;  %v3208_v13 = vld [vmem:[#allocation4 + $0x328] sm:$0xf]  ;;  %v4329_v52 = vld [vmem:[#allocation4 + $0x5d4] sm:$0xf0] }
  0x84   :  { %1459 = vmatpush.bf16.msrb.mxu1 %v3033_v14  ;;  %v4245_v14 = vld [vmem:[#allocation4 + $0x334] sm:$0xf0]  ;;  %v3545_v58 = vor.u32 %v4329_v52, %v3544_v50  ;;  %v3512_v10 = vld [vmem:[#allocation4 + $0x588] sm:$0xf] }
  0x85   :  { %1472 = vmatpush.bf16.msrb.mxu2 %v3161_v15  ;;  %v2825_v15 = vor.u32 %v4149_v7, %v2824_v6  ;;  %v3209_v27 = vor.u32 %v4245_v14, %v3208_v13  ;;  %v4325_v0 = vld [vmem:[#allocation4 + $0x5b4] sm:$0xf0]  ;;  %v2893_v7 = vor.u32 %v4163_v1, %v2890_v2  ;;  %v4159_v13 = vld [vmem:[#allocation4 + $0x8c] sm:$0xf]  ;;  %v2874_v14 = vld [vmem:[#allocation4 + $0x98] sm:$0xf0] }
  0x86   :  { %1485 = vmatpush.bf16.msrb.mxu3 %v3289_v23  ;;  %v3081_v23 = vor.u32 %v4213_v12, %v3080_v11  ;;  %v3529_v6 = vor.u32 %v4325_v0, %v3528_v62  ;;  %v4321_v12 = vld [vmem:[#allocation4 + $0x594] sm:$0xf0]  ;;  %v3368_v24 = vld [vmem:[#allocation4 + $0x468] sm:$0xf]  ;;  %v4143_v2 = vld [vmem:[#allocation4 + $0xc] sm:$0xf] }
  0x87   :  { %1447 = vmatpush.bf16.msrb.mxu0 %v2889_v29  ;;  %v3192_v29 = vld [vmem:[#allocation4 + $0x308] sm:$0xf]  ;;  %v4285_v25 = vld [vmem:[#allocation4 + $0x474] sm:$0xf0] }
  0x88   :  { %1460 = vmatpush.bf16.msrb.mxu1 %v3017_v30  ;;  %v4241_v30 = vld [vmem:[#allocation4 + $0x314] sm:$0xf0]  ;;  %v3496_v26 = vld [vmem:[#allocation4 + $0x568] sm:$0xf] }
  0x89   :  { %1473 = vmatpush.bf16.msrb.mxu2 %v3145_v31  ;;  %v3432_v31 = vld [vmem:[#allocation4 + $0x4e8] sm:$0xf]  ;;  %v4317_v28 = vld [vmem:[#allocation4 + $0x574] sm:$0xf0] }
  0x8a   :  { %1486 = vmatpush.bf16.msrb.mxu3 %v3273_v36  ;;  %v4333_v36 = vld [vmem:[#allocation4 + $0x5f4] sm:$0xf0]  ;;  %v3352_v37 = vld [vmem:[#allocation4 + $0x448] sm:$0xf] }
  0x8b   :  { %1448 = vmatpush.bf16.msrb.mxu0 %v2873_v43  ;;  %v3050_v43 = vld [vmem:[#allocation4 + $0x1f8] sm:$0xf0]  ;;  %v3561_v46 = vor.u32 %v4333_v36, %v3560_v33  ;;  %v3369_v33 = vor.u32 %v4285_v25, %v3368_v24  ;;  %v4281_v39 = vld [vmem:[#allocation4 + $0x454] sm:$0xf0]  ;;  %v3336_v50 = vld [vmem:[#allocation4 + $0x428] sm:$0xf] }
  0x8c   :  { %1461 = vmatpush.bf16.msrb.mxu1 %v3001_v44  ;;  %v3193_v44 = vor.u32 %v4241_v30, %v3192_v29  ;;  %v3053_v51 = vor.u32 %v4203_v42, %v3050_v43  ;;  %v4155_v29 = vld [vmem:[#allocation4 + $0x6c] sm:$0xf]  ;;  %v2858_v30 = vld [vmem:[#allocation4 + $0x78] sm:$0xf0]  ;;  %v4313_v42 = vld [vmem:[#allocation4 + $0x554] sm:$0xf0] }
  0x8d   :  { %1474 = vmatpush.bf16.msrb.mxu2 %v3129_v45  ;;  %v3433_v45 = vor.u32 %v4301_v32, %v3432_v31  ;;  %v4187_v31 = vld [vmem:[#allocation4 + $0x16c] sm:$0xf]  ;;  %v2986_v32 = vld [vmem:[#allocation4 + $0x178] sm:$0xf0]  ;;  %v2861_v36 = vor.u32 %v4155_v29, %v2858_v30  ;;  %v3464_v52 = vld [vmem:[#allocation4 + $0x528] sm:$0xf] }
  0x8e   :  { %1487 = vmatpush.bf16.msrb.mxu3 %v3257_v49  ;;  %v4297_v49 = vld [vmem:[#allocation4 + $0x4d4] sm:$0xf0]  ;;  %v4151_v43 = vld [vmem:[#allocation4 + $0x4c] sm:$0xf]  ;;  %v3448_v0 = vld [vmem:[#allocation4 + $0x508] sm:$0xf] }
  0x8f   :  { %1449 = vmatpush.bf16.msrb.mxu0 %v2857_v55  ;;  %v4199_v55 = vld [vmem:[#allocation4 + $0x1cc] sm:$0xf]  ;;  %v4309_v54 = vld [vmem:[#allocation4 + $0x534] sm:$0xf0]  ;;  %v3290_v30 = vld [vmem:[#allocation4 + $0x3d8] sm:$0xf0] }
  0x90   :  { %1462 = vmatpush.bf16.msrb.mxu1 %v2985_v56  ;;  %v3034_v56 = vld [vmem:[#allocation4 + $0x1d8] sm:$0xf0]  ;;  %v3465_v62 = vor.u32 %v4309_v54, %v3464_v52  ;;  %v4305_v1 = vld [vmem:[#allocation4 + $0x514] sm:$0xf0]  ;;  %v4223_v52 = vld [vmem:[#allocation4 + $0x28c] sm:$0xf] }
  0x91   :  { %1475 = vmatpush.bf16.msrb.mxu2 %v3113_v57  ;;  %v3417_v57 = vor.u32 %v4297_v49, %v3416_v48  ;;  %v3037_v63 = vor.u32 %v4199_v55, %v3034_v56  ;;  %v4147_v55 = vld [vmem:[#allocation4 + $0x2c] sm:$0xf]  ;;  %v2826_v56 = vld [vmem:[#allocation4 + $0x38] sm:$0xf0] }
  0x92   :  { %1488 = vmatpush.bf16.msrb.mxu3 %v3241_v61  ;;  %v4293_v61 = vld [vmem:[#allocation4 + $0x4b4] sm:$0xf0]  ;;  %v4255_v54 = vld [vmem:[#allocation4 + $0x38c] sm:$0xf] }
  0x93   :  { %1450 = vmatpush.bf16.msrb.mxu0 %v2841_v3  ;;  %v4195_v3 = vld [vmem:[#allocation4 + $0x1ac] sm:$0xf] }
  0x94   :  { %1463 = vmatpush.bf16.msrb.mxu1 %v2969_v4  ;;  %v3018_v4 = vld [vmem:[#allocation4 + $0x1b8] sm:$0xf0] }
  0x95   :  { %1476 = vmatpush.bf16.msrb.mxu2 %v3097_v5  ;;  %v3401_v5 = vor.u32 %v4293_v61, %v3400_v60  ;;  %v3021_v11 = vor.u32 %v4195_v3, %v3018_v4  ;;  %v3320_v60 = vld [vmem:[#allocation4 + $0x408] sm:$0xf]  ;;  %v4273_v61 = vld [vmem:[#allocation4 + $0x414] sm:$0xf0]  ;;  %v2810_v4 = vld [vmem:[#allocation4 + $0x18] sm:$0xf0] }
  0x96   :  { %1489 = vmatpush.bf16.msrb.mxu3 %v3225_v9  ;;  %v4289_v9 = vld [vmem:[#allocation4 + $0x494] sm:$0xf0] }
  0x97   :  { %1451 = vmatpush.bf16.msrb.mxu0 %v2825_v15  ;;  %v4191_v15 = vld [vmem:[#allocation4 + $0x18c] sm:$0xf]  ;;  %v3385_v17 = vor.u32 %v4289_v9, %v3384_v8  ;;  %v3178_v8 = vld [vmem:[#allocation4 + $0x2f8] sm:$0xf0] }
  0x98   :  { %1464 = vmatpush.bf16.msrb.mxu1 %v2953_v21  ;;  %v3513_v21 = vor.u32 %v4321_v12, %v3512_v10  ;;  %v4267_v9 = vld [vmem:[#allocation4 + $0x3ec] sm:$0xf]  ;;  %v3321_v10 = vor.u32 %v4273_v61, %v3320_v60 }
  0x99   :  { %1477 = vmatpush.bf16.msrb.mxu2 %v3081_v23  ;;  %v2877_v23 = vor.u32 %v4159_v13, %v2874_v14  ;;  %v4299_v12 = vld [vmem:[#allocation4 + $0x4ec] sm:$0xf]  ;;  %v3434_v13 = vld [vmem:[#allocation4 + $0x4f8] sm:$0xf0]  ;;  %v3449_v14 = vor.u32 %v4305_v1, %v3448_v0 }
  0x9a   :  { %1490 = vmatpush.bf16.msrb.mxu3 %v3209_v27  ;;  %v3005_v27 = vor.u32 %v4191_v15, %v3002_v16  ;;  %v2813_v15 = vor.u32 %v4143_v2, %v2810_v4  ;;  %v4331_v16 = vld [vmem:[#allocation4 + $0x5ec] sm:$0xf]  ;;  %v3437_v25 = vor.u32 %v4299_v12, %v3434_v13  ;;  %v3242_v2 = vld [vmem:[#allocation4 + $0x378] sm:$0xf0] }
  0x9b   :  { %1452 = vmatpush.bf16.msrb.mxu0 %v2809_v34  ;;  %v3497_v34 = vor.u32 %v4317_v28, %v3496_v26  ;;  %v4231_v26 = vld [vmem:[#allocation4 + $0x2cc] sm:$0xf]  ;;  %v3370_v4 = vld [vmem:[#allocation4 + $0x478] sm:$0xf0] }
  0x9c   :  { %1465 = vmatpush.bf16.msrb.mxu1 %v2937_v40  ;;  %v3480_v40 = vld [vmem:[#allocation4 + $0x548] sm:$0xf]  ;;  %v4263_v28 = vld [vmem:[#allocation4 + $0x3cc] sm:$0xf] }
  0x9d   :  { %1478 = vmatpush.bf16.msrb.mxu2 %v3065_v41  ;;  %v2989_v41 = vor.u32 %v4187_v31, %v2986_v32  ;;  %v3481_v48 = vor.u32 %v4313_v42, %v3480_v40  ;;  %v4295_v31 = vld [vmem:[#allocation4 + $0x4cc] sm:$0xf]  ;;  %v3418_v32 = vld [vmem:[#allocation4 + $0x4d8] sm:$0xf0] }
  0x9e   :  { %1491 = vmatpush.bf16.msrb.mxu3 %v3193_v44  ;;  %1453 = vmatmul.bf16.vlgmr.msrb.gmra.mxu0 %v4707_v18  ;;  %v2842_v44 = vld [vmem:[#allocation4 + $0x58] sm:$0xf0]  ;;  %v4227_v40 = vld [vmem:[#allocation4 + $0x2ac] sm:$0xf] }
  0x9f   :  { %1497 = vmatpush.bf16.msra.mxu0 %v3433_v45  ;;  %1466 = vmatmul.bf16.vlgmr.msrb.gmra.mxu1 %v4711_v20  ;;  %v4183_v45 = vld [vmem:[#allocation4 + $0x14c] sm:$0xf]  ;;  %v2845_v49 = vor.u32 %v4151_v43, %v2842_v44  ;;  %v3274_v44 = vld [vmem:[#allocation4 + $0x3b8] sm:$0xf0] }
  0xa0   :  { %1510 = vmatpush.bf16.msra.mxu1 %v3561_v46  ;;  %1479 = vmatmul.bf16.vlgmr.msrb.gmra.mxu2 %v4709_v19  ;;  %v2970_v46 = vld [vmem:[#allocation4 + $0x158] sm:$0xf0]  ;;  %v4259_v42 = vld [vmem:[#allocation4 + $0x3ac] sm:$0xf] }
  0xa1   :  { %1523 = vmatpush.bf16.msra.mxu2 %v2925_v47  ;;  %1492 = vmatmul.bf16.vlgmr.msrb.gmra.mxu3 %v4713_v22  ;;  %v3353_v47 = vor.u32 %v4281_v39, %v3352_v37  ;;  %v2973_v53 = vor.u32 %v4183_v45, %v2970_v46  ;;  %v3293_v37 = vor.u32 %v4263_v28, %v3290_v30  ;;  %v4291_v45 = vld [vmem:[#allocation4 + $0x4ac] sm:$0xf]  ;;  %v3402_v46 = vld [vmem:[#allocation4 + $0x4b8] sm:$0xf0] }
  0xa2   :  { %1536 = vmatpush.bf16.msra.mxu3 %v3053_v51  ;;  %v4277_v51 = vld [vmem:[#allocation4 + $0x434] sm:$0xf0]  ;;  %v3421_v39 = vor.u32 %v4295_v31, %v3418_v32  ;;  %v4251_v0 = vld [vmem:[#allocation4 + $0x36c] sm:$0xf]  ;;  %v3210_v32 = vld [vmem:[#allocation4 + $0x338] sm:$0xf0] }
  0xa3   :  { %1498 = vmatpush.bf16.msra.mxu0 %v3417_v57  ;;  %v4179_v57 = vld [vmem:[#allocation4 + $0x12c] sm:$0xf] }
  0xa4   :  { %1511 = vmatpush.bf16.msra.mxu1 %v3545_v58  ;;  %v2954_v58 = vld [vmem:[#allocation4 + $0x138] sm:$0xf0]  ;;  %v4247_v12 = vld [vmem:[#allocation4 + $0x34c] sm:$0xf] }
  0xa5   :  { %1524 = vmatpush.bf16.msra.mxu2 %v2909_v59  ;;  %v3337_v59 = vor.u32 %v4277_v51, %v3336_v50  ;;  %v2957_v3 = vor.u32 %v4179_v57, %v2954_v58  ;;  %v3277_v50 = vor.u32 %v4259_v42, %v3274_v44  ;;  %v3405_v51 = vor.u32 %v4291_v45, %v3402_v46  ;;  %v4287_v57 = vld [vmem:[#allocation4 + $0x48c] sm:$0xf]  ;;  %v3386_v58 = vld [vmem:[#allocation4 + $0x498] sm:$0xf0] }
  0xa6   :  { %1537 = vmatpush.bf16.msra.mxu3 %v3037_v63  ;;  %v2829_v63 = vor.u32 %v4147_v55, %v2826_v56  ;;  %v3258_v56 = vld [vmem:[#allocation4 + $0x398] sm:$0xf0]  ;;  %v4211_v28 = vld [vmem:[#allocation4 + $0x22c] sm:$0xf] }
  0xa7   :  { %1499 = vmatpush.bf16.msra.mxu0 %v3401_v5  ;;  %v4175_v5 = vld [vmem:[#allocation4 + $0x10c] sm:$0xf]  ;;  %v3261_v61 = vor.u32 %v4255_v54, %v3258_v56  ;;  %v3194_v45 = vld [vmem:[#allocation4 + $0x318] sm:$0xf0] }
  0xa8   :  { %1512 = vmatpush.bf16.msra.mxu1 %v3529_v6  ;;  %v2938_v6 = vld [vmem:[#allocation4 + $0x118] sm:$0xf0]  ;;  %v4243_v30 = vld [vmem:[#allocation4 + $0x32c] sm:$0xf] }
  0xa9   :  { %1525 = vmatpush.bf16.msra.mxu2 %v2893_v7  ;;  %v4235_v7 = vld [vmem:[#allocation4 + $0x2ec] sm:$0xf] }
  0xaa   :  { %1538 = vmatpush.bf16.msra.mxu3 %v3021_v11  ;;  %v3306_v11 = vld [vmem:[#allocation4 + $0x3f8] sm:$0xf0]  ;;  %v4239_v44 = vld [vmem:[#allocation4 + $0x30c] sm:$0xf] }
  0xab   :  { %1500 = vmatpush.bf16.msra.mxu0 %v3385_v17  ;;  %v3562_v17 = vld [vmem:[#allocation4 + $0x5f8] sm:$0xf0]  ;;  %v3309_v24 = vor.u32 %v4267_v9, %v3306_v11 }
  0xac   :  { %1513 = vmatpush.bf16.msra.mxu1 %v3513_v21  ;;  %v2941_v21 = vor.u32 %v4175_v5, %v2938_v6  ;;  %v3565_v29 = vor.u32 %v4331_v16, %v3562_v17  ;;  %v4315_v5 = vld [vmem:[#allocation4 + $0x56c] sm:$0xf]  ;;  %v3498_v6 = vld [vmem:[#allocation4 + $0x578] sm:$0xf0] }
  0xad   :  { %1526 = vmatpush.bf16.msra.mxu2 %v2877_v23  ;;  %v3181_v23 = vor.u32 %v4235_v7, %v3178_v8  ;;  %v3245_v8 = vor.u32 %v4251_v0, %v3242_v2  ;;  %v3098_v11 = vld [vmem:[#allocation4 + $0x258] sm:$0xf0]  ;;  %v3501_v13 = vor.u32 %v4315_v5, %v3498_v6  ;;  %v4311_v17 = vld [vmem:[#allocation4 + $0x54c] sm:$0xf]  ;;  %v3628_v6 = vld [vmem:[#allocation6 + $0x78] sm:$0xf] }
  0xae   :  { %1539 = vmatpush.bf16.msra.mxu3 %v3005_v27  ;;  %v3162_v27 = vld [vmem:[#allocation4 + $0x2d8] sm:$0xf0] }
  0xaf   :  { %1501 = vmatpush.bf16.msra.mxu0 %v3369_v33  ;;  %v4327_v33 = vld [vmem:[#allocation4 + $0x5cc] sm:$0xf]  ;;  %v3354_v16 = vld [vmem:[#allocation4 + $0x458] sm:$0xf0] }
  0xb0   :  { %1514 = vmatpush.bf16.msra.mxu1 %v3497_v34  ;;  %v3546_v34 = vld [vmem:[#allocation4 + $0x5d8] sm:$0xf0] }
  0xb1   :  { %1527 = vmatpush.bf16.msra.mxu2 %v2861_v36  ;;  %v3165_v36 = vor.u32 %v4231_v26, %v3162_v27  ;;  %v3549_v43 = vor.u32 %v4327_v33, %v3546_v34  ;;  %v4275_v33 = vld [vmem:[#allocation4 + $0x42c] sm:$0xf]  ;;  %v3338_v34 = vld [vmem:[#allocation4 + $0x438] sm:$0xf0] }
  0xb2   :  { %1540 = vmatpush.bf16.msra.mxu3 %v2989_v41  ;;  %v3146_v41 = vld [vmem:[#allocation4 + $0x2b8] sm:$0xf0]  ;;  %v3341_v42 = vor.u32 %v4275_v33, %v3338_v34  ;;  %v3688_v33 = vld [vmem:[#allocation6 + $0xf0] sm:$0xf] }
  0xb3   :  { %1502 = vmatpush.bf16.msra.mxu0 %v3353_v47  ;;  %v4323_v47 = vld [vmem:[#allocation4 + $0x5ac] sm:$0xf]  ;;  %v4353_v0 = vld [vmem:[#allocation6 + $0x98] sm:$0xf0] }
  0xb4   :  { %1515 = vmatpush.bf16.msra.mxu1 %v3481_v48  ;;  %v3530_v48 = vld [vmem:[#allocation4 + $0x5b8] sm:$0xf0] }
  0xb5   :  { %1528 = vmatpush.bf16.msra.mxu2 %v2845_v49  ;;  %v3149_v49 = vor.u32 %v4227_v40, %v3146_v41  ;;  %v3533_v55 = vor.u32 %v4323_v47, %v3530_v48  ;;  %v4207_v40 = vld [vmem:[#allocation4 + $0x20c] sm:$0xf]  ;;  %v3213_v41 = vor.u32 %v4243_v30, %v3210_v32  ;;  %v3322_v48 = vld [vmem:[#allocation4 + $0x418] sm:$0xf0] }
  0xb6   :  { %1541 = vmatpush.bf16.msra.mxu3 %v2973_v53  ;;  %v3130_v53 = vld [vmem:[#allocation4 + $0x298] sm:$0xf0]  ;;  %v4271_v47 = vld [vmem:[#allocation4 + $0x40c] sm:$0xf] }
  0xb7   :  { %1503 = vmatpush.bf16.msra.mxu0 %v3337_v59  ;;  %v4319_v59 = vld [vmem:[#allocation4 + $0x58c] sm:$0xf]  ;;  %v3133_v60 = vor.u32 %v4223_v52, %v3130_v53  ;;  %v3652_v52 = vld [vmem:[#allocation6 + $0xa8] sm:$0xf]  ;;  %v4356_v53 = vld [vmem:[#allocation6 + $0xb0] sm:$0xf0] }
  0xb8   :  { %1516 = vmatpush.bf16.msra.mxu1 %v3465_v62  ;;  %v4219_v62 = vld [vmem:[#allocation4 + $0x26c] sm:$0xf]  ;;  %v4377_v2 = vld [vmem:[#allocation6 + $0x158] sm:$0xf0] }
  0xb9   :  { %1529 = vmatpush.bf16.msra.mxu2 %v2829_v63  ;;  %v3114_v63 = vld [vmem:[#allocation4 + $0x278] sm:$0xf0] }
  0xba   :  { %1542 = vmatpush.bf16.msra.mxu3 %v2957_v3  ;;  %v4283_v3 = vld [vmem:[#allocation4 + $0x46c] sm:$0xf]  ;;  %v3117_v7 = vor.u32 %v4219_v62, %v3114_v63  ;;  %v3640_v63 = vld [vmem:[#allocation6 + $0x90] sm:$0xf]  ;;  %v4341_v32 = vld [vmem:[#allocation6 + $0x38] sm:$0xf0] }
  0xbb   :  { %1504 = vmatpush.bf16.msra.mxu0 %v3321_v10  ;;  %v3373_v9 = vor.u32 %v4283_v3, %v3370_v4  ;;  %v4215_v10 = vld [vmem:[#allocation4 + $0x24c] sm:$0xf]  ;;  %v3641_v3 = vor.u32 %v4353_v0, %v3640_v63  ;;  %v4365_v34 = vld [vmem:[#allocation6 + $0xf8] sm:$0xf0]  ;;  %v3750_v63 = vld [vmem:[#allocation6 + $0x174] sm:$0xf0] }
  0xbc   :  { %1517 = vmatpush.bf16.msra.mxu1 %v3449_v14  ;;  %v3226_v14 = vld [vmem:[#allocation4 + $0x358] sm:$0xf0] }
  0xbd   :  { %1530 = vmatpush.bf16.msra.mxu2 %v2813_v15  ;;  %v4279_v15 = vld [vmem:[#allocation4 + $0x44c] sm:$0xf]  ;;  %v3229_v26 = vor.u32 %v4247_v12, %v3226_v14 }
  0xbe   :  { %1543 = vmatpush.bf16.msra.mxu3 %v2941_v21  ;;  %1505 = vmatmul.bf16.vlgmr.msra.gmra.mxu0 %v4719_v35  ;;  %v3482_v21 = vld [vmem:[#allocation4 + $0x558] sm:$0xf0]  ;;  %v3357_v27 = vor.u32 %v4279_v15, %v3354_v16  ;;  %v4347_v14 = vld [vmem:[#allocation6 + $0x68] sm:$0xf0]  ;;  %v3712_v15 = vld [vmem:[#allocation6 + $0x120] sm:$0xf] }
  0xbf   :  { %1549 = vmatpush.bf16.msrb.mxu0 %v3181_v23  ;;  %1518 = vmatmul.bf16.vlgmr.msra.gmra.mxu1 %v4721_v38  ;;  %v4739_v23 = vpop.f32.mrf.mxu0  ;;  %v3485_v31 = vor.u32 %v4311_v17, %v3482_v21 }
  0xc0   :  { %1562 = vmatpush.bf16.msrb.mxu1 %v3309_v24  ;;  %1531 = vmatmul.bf16.vlgmr.msra.gmra.mxu2 %v4707_v18  ;;  %v3514_v18 = vld [vmem:[#allocation4 + $0x598] sm:$0xf0]  ;;  %v3101_v24 = vor.u32 %v4215_v10, %v3098_v11  ;;  %v4374_v10 = vld [vmem:[#allocation6 + $0x140] sm:$0xf0] }
  0xc1   :  { %1575 = vmatpush.bf16.msrb.mxu2 %v3437_v25  ;;  %1544 = vmatmul.bf16.vlgmr.msra.gmra.mxu3 %v4711_v20  ;;  %v3389_v20 = vor.u32 %v4287_v57, %v3386_v58  ;;  %v3517_v1 = vor.u32 %v4319_v59, %v3514_v18  ;;  %v4741_v25 = vpop.f32.mrf.mxu1  ;;  %v3748_v57 = vld [vmem:[#allocation6 + $0x168] sm:$0xf]  ;;  %v4380_v58 = vld [vmem:[#allocation6 + $0x170] sm:$0xf0]  ;;  %v3197_v18 = vor.u32 %v4239_v44, %v3194_v45  ;;  %v3580_v45 = vld [vmem:[#allocation6 + $0x18] sm:$0xf] }
  0xc2   :  { %1588 = vmatpush.bf16.msrb.mxu3 %v3565_v29  ;;  %v3082_v29 = vld [vmem:[#allocation4 + $0x238] sm:$0xf0]  ;;  %v3749_v62 = vor.u32 %v4380_v58, %v3748_v57  ;;  %v3689_v44 = vor.u32 %v4365_v34, %v3688_v33  ;;  %v3664_v58 = vld [vmem:[#allocation6 + $0xc0] sm:$0xf]  ;;  %v4370_v33 = vld [vmem:[#allocation6 + $0x124] sm:$0xf] }
  0xc3   :  { %1550 = vmatpush.bf16.msrb.mxu0 %v3165_v36  ;;  %v4307_v36 = vld [vmem:[#allocation4 + $0x52c] sm:$0xf]  ;;  %v3714_v34 = vld [vmem:[#allocation6 + $0x12c] sm:$0xf0] }
  0xc4   :  { %1563 = vmatpush.bf16.msrb.mxu1 %v3293_v37  ;;  %v3466_v37 = vld [vmem:[#allocation4 + $0x538] sm:$0xf0] }
  0xc5   :  { %1576 = vmatpush.bf16.msrb.mxu2 %v3421_v39  ;;  %v3085_v39 = vor.u32 %v4211_v28, %v3082_v29  ;;  %v3469_v46 = vor.u32 %v4307_v36, %v3466_v37  ;;  %v3844_v37 = vld [vmem:[#allocation6 + $0x228] sm:$0xf] }
  0xc6   :  { %1589 = vmatpush.bf16.msrb.mxu3 %v3549_v43  ;;  %v3066_v43 = vld [vmem:[#allocation4 + $0x218] sm:$0xf0] }
  0xc7   :  { %1551 = vmatpush.bf16.msrb.mxu0 %v3149_v49  ;;  %v4303_v49 = vld [vmem:[#allocation4 + $0x50c] sm:$0xf]  ;;  %v1300_v54 = vpop.f32.mrf.mxu0  ;;  %v3069_v56 = vor.u32 %v4207_v40, %v3066_v43 }
  0xc8   :  { %1564 = vmatpush.bf16.msrb.mxu1 %v3277_v50  ;;  %v4335_v54 = vld [vmem:[#allocation6 + $0x8] sm:$0xf0] }
  0xc9   :  { %1577 = vmatpush.bf16.msrb.mxu2 %v3405_v51  ;;  %v3450_v51 = vld [vmem:[#allocation4 + $0x518] sm:$0xf0]  ;;  %v1313_v59 = vpop.f32.mrf.mxu1 }
  0xca   :  { %1590 = vmatpush.bf16.msrb.mxu3 %v3533_v55  ;;  %v1324_v50 = vpop.f32.mrf.mxu2  ;;  %v4359_v59 = vld [vmem:[#allocation6 + $0xc8] sm:$0xf0] }
  0xcb   :  { %1552 = vmatpush.bf16.msrb.mxu0 %v3133_v60  ;;  %v4743_v55 = vpop.f32.mrf.mxu3  ;;  %v3325_v60 = vor.u32 %v4271_v47, %v3322_v48  ;;  %v3676_v47 = vld [vmem:[#allocation6 + $0xd8] sm:$0xf]  ;;  %v4362_v48 = vld [vmem:[#allocation6 + $0xe0] sm:$0xf0] }
  0xcc   :  { %1565 = vmatpush.bf16.msrb.mxu1 %v3261_v61  ;;  %v3453_v61 = vor.u32 %v4303_v49, %v3450_v51  ;;  %v3832_v49 = vld [vmem:[#allocation6 + $0x210] sm:$0xf]  ;;  %v3677_v57 = vor.u32 %v4362_v48, %v3676_v47  ;;  %v4367_v47 = vld [vmem:[#allocation6 + $0x10c] sm:$0xf]  ;;  %v3702_v48 = vld [vmem:[#allocation6 + $0x114] sm:$0xf0] }
  0xcd   :  { %1578 = vmatpush.bf16.msrb.mxu2 %v3389_v20  ;;  %v3653_v20 = vor.u32 %v4356_v53, %v3652_v52  ;;  %v3568_v53 = vld [vmem:[#allocation6] sm:$0xf] }
  0xce   :  { %1591 = vmatpush.bf16.msrb.mxu3 %v3517_v1  ;;  %v3736_v1 = vld [vmem:[#allocation6 + $0x150] sm:$0xf] }
  0xcf   :  { %1553 = vmatpush.bf16.msrb.mxu0 %v3117_v7  ;;  %v3737_v5 = vor.u32 %v4377_v2, %v3736_v1  ;;  %v4350_v7 = vld [vmem:[#allocation6 + $0x80] sm:$0xf0]  ;;  %v3569_v2 = vor.u32 %v4335_v54, %v3568_v53  ;;  %v4364_v53 = vld [vmem:[#allocation6 + $0xf4] sm:$0xf]  ;;  %v3760_v54 = vld [vmem:[#allocation6 + $0x180] sm:$0xf] }
  0xd0   :  { %1566 = vmatpush.bf16.msrb.mxu1 %v3245_v8  ;;  %v3629_v11 = vor.u32 %v4350_v7, %v3628_v6  ;;  %v4352_v6 = vld [vmem:[#allocation6 + $0x94] sm:$0xf] }
  0xd1   :  { %1579 = vmatpush.bf16.msrb.mxu2 %v3373_v9  ;;  %v3724_v9 = vld [vmem:[#allocation6 + $0x138] sm:$0xf] }
  0xd2   :  { %1592 = vmatpush.bf16.msrb.mxu3 %v3501_v13  ;;  %v1326_v4 = vpop.f32.mrf.mxu2  ;;  %v3725_v12 = vor.u32 %v4374_v10, %v3724_v9  ;;  %v3616_v13 = vld [vmem:[#allocation6 + $0x60] sm:$0xf]  ;;  %v4395_v10 = vld [vmem:[#allocation6 + $0x1e8] sm:$0xf0] }
  0xd3   :  { %1554 = vmatpush.bf16.msrb.mxu0 %v3101_v24  ;;  %v1339_v8 = vpop.f32.mrf.mxu3  ;;  %v3617_v17 = vor.u32 %v4347_v14, %v3616_v13  ;;  %v3604_v24 = vld [vmem:[#allocation6 + $0x48] sm:$0xf]  ;;  %v3665_v4 = vor.u32 %v4359_v59, %v3664_v58  ;;  %v3808_v9 = vld [vmem:[#allocation6 + $0x1e0] sm:$0xf] }
  0xd4   :  { %1567 = vmatpush.bf16.msrb.mxu1 %v3229_v26  ;;  %v4344_v26 = vld [vmem:[#allocation6 + $0x50] sm:$0xf0]  ;;  %v3642_v8 = vld [vmem:[#allocation6 + $0x9c] sm:$0xf0]  ;;  %v3809_v13 = vor.u32 %v4395_v10, %v3808_v9  ;;  %v4334_v10 = vld [vmem:[#allocation6 + $0x4] sm:$0xf] }
  0xd5   :  { %1580 = vmatpush.bf16.msrb.mxu2 %v3357_v27  ;;  %v4368_v27 = vld [vmem:[#allocation6 + $0x110] sm:$0xf0]  ;;  %v3605_v28 = vor.u32 %v4344_v26, %v3604_v24  ;;  %v3726_v24 = vld [vmem:[#allocation6 + $0x144] sm:$0xf0]  ;;  %v3690_v58 = vld [vmem:[#allocation6 + $0xfc] sm:$0xf0] }
  0xd6   :  { %1593 = vmatpush.bf16.msrb.mxu3 %v3485_v31  ;;  %v3592_v31 = vld [vmem:[#allocation6 + $0x30] sm:$0xf] }
  0xd7   :  { %1555 = vmatpush.bf16.msrb.mxu0 %v3085_v39  ;;  %v4404_v39 = vld [vmem:[#allocation6 + $0x230] sm:$0xf0] }
  0xd8   :  { %1568 = vmatpush.bf16.msrb.mxu1 %v3213_v41  ;;  %v3845_v40 = vor.u32 %v4404_v39, %v3844_v37  ;;  %v3593_v41 = vor.u32 %v4341_v32, %v3592_v31  ;;  %v4389_v31 = vld [vmem:[#allocation6 + $0x1b8] sm:$0xf0] }
  0xd9   :  { %1581 = vmatpush.bf16.msrb.mxu2 %v3341_v42 }
  0xda   :  { %1594 = vmatpush.bf16.msrb.mxu3 %v3469_v46  ;;  %v4338_v46 = vld [vmem:[#allocation6 + $0x20] sm:$0xf0] }
  0xdb   :  { %1556 = vmatpush.bf16.msrb.mxu0 %v3069_v56  ;;  %v1350_v16 = vpop.f32.mrf.mxu0  ;;  %v3581_v52 = vor.u32 %v4338_v46, %v3580_v45 }
  0xdc   :  { %1569 = vmatpush.bf16.msrb.mxu1 %v3197_v18  ;;  %v1363_v21 = vpop.f32.mrf.mxu1  ;;  %v3654_v18 = vld [vmem:[#allocation6 + $0xb4] sm:$0xf0] }
  0xdd   :  { %1582 = vmatpush.bf16.msrb.mxu2 %v3325_v60 }
  0xde   :  { %1595 = vmatpush.bf16.msrb.mxu3 %v3453_v61  ;;  %1557 = vmatmul.bf16.vlgmr.msrb.gmra.mxu0 %v4709_v19  ;;  %v4371_v19 = vld [vmem:[#allocation6 + $0x128] sm:$0xf0]  ;;  %v3820_v61 = vld [vmem:[#allocation6 + $0x1f8] sm:$0xf] }
  0xdf   :  { %2253 = vmatpush.bf16.msra.mxu0 %v3653_v20  ;;  %1570 = vmatmul.bf16.vlgmr.msrb.gmra.mxu1 %v4713_v22  ;;  %v1312_v22 = vadd.f32 %v4741_v25, %v4739_v23  ;;  %v4398_v20 = vld [vmem:[#allocation6 + $0x200] sm:$0xf0] }
  0xe0   :  { %2266 = vmatpush.bf16.msra.mxu1 %v3749_v62  ;;  %1583 = vmatmul.bf16.vlgmr.msrb.gmra.mxu2 %v4719_v35  ;;  %v3713_v35 = vor.u32 %v4371_v19, %v3712_v15  ;;  %v4379_v62 = vld [vmem:[#allocation6 + $0x16c] sm:$0xf]  ;;  %v3821_v1 = vor.u32 %v4398_v20, %v3820_v61  ;;  %v3645_v15 = vor.u32 %v4352_v6, %v3642_v8  ;;  %v4349_v19 = vld [vmem:[#allocation6 + $0x7c] sm:$0xf]  ;;  %v3834_v8 = vld [vmem:[#allocation6 + $0x21c] sm:$0xf0] }
  0xe1   :  { %1596 = vmatmul.bf16.vlgmr.msrb.gmra.mxu3 %v4721_v38  ;;  %v3700_v38 = vld [vmem:[#allocation6 + $0x108] sm:$0xf]  ;;  %v1325_v29 = vadd.f32 %v1324_v50, %v1312_v22  ;;  %2279 = vmatpush.bf16.msra.mxu2 %v3845_v40  ;;  %v4401_v50 = vld [vmem:[#allocation6 + $0x218] sm:$0xf0]  ;;  %v3753_v7 = vor.u32 %v4379_v62, %v3750_v63  ;;  %v4392_v22 = vld [vmem:[#allocation6 + $0x1d0] sm:$0xf0]  ;;  %v3717_v40 = vor.u32 %v4370_v33, %v3714_v34 }
  0xe2   :  { %v3701_v30 = vor.u32 %v4368_v27, %v3700_v38  ;;  %v3833_v51 = vor.u32 %v4401_v50, %v3832_v49  ;;  %v4346_v27 = vld [vmem:[#allocation6 + $0x64] sm:$0xf]  ;;  %v4340_v50 = vld [vmem:[#allocation6 + $0x34] sm:$0xf]  ;;  %v3928_v33 = vld [vmem:[#allocation6 + $0x2d0] sm:$0xf] }
  0xe3   :  { %2254 = vmatpush.bf16.msra.mxu0 %v3641_v3  ;;  %v4751_v36 = vpop.f32.mrf.mxu2  ;;  %v1352_v25 = vpop.f32.mrf.mxu0  ;;  %v1338_v43 = vadd.f32 %v4743_v55, %v1325_v29  ;;  %v4355_v55 = vld [vmem:[#allocation6 + $0xac] sm:$0xf]  ;;  %v3618_v29 = vld [vmem:[#allocation6 + $0x6c] sm:$0xf0]  ;;  %v4425_v34 = vld [vmem:[#allocation6 + $0x2d8] sm:$0xf0] }
  0xe4   :  { %2267 = vmatpush.bf16.msra.mxu1 %v3737_v5  ;;  %v4753_v23 = vpop.f32.mrf.mxu3  ;;  %v1365_v42 = vpop.f32.mrf.mxu1  ;;  %v3657_v5 = vor.u32 %v4355_v55, %v3654_v18  ;;  %v3621_v39 = vor.u32 %v4346_v27, %v3618_v29  ;;  %v4343_v25 = vld [vmem:[#allocation6 + $0x4c] sm:$0xf]  ;;  %v3846_v18 = vld [vmem:[#allocation6 + $0x234] sm:$0xf0]  ;;  %v3822_v27 = vld [vmem:[#allocation6 + $0x204] sm:$0xf0] }
  0xe5   :  { %v1351_v56 = vadd.f32 %v1350_v16, %v1338_v43  ;;  %2280 = vmatpush.bf16.msra.mxu2 %v3833_v51  ;;  %v1390_v32 = vadd.f32 %v4753_v23, %v4751_v36  ;;  %v3606_v42 = vld [vmem:[#allocation6 + $0x54] sm:$0xf0]  ;;  %v3594_v51 = vld [vmem:[#allocation6 + $0x3c] sm:$0xf0]  ;;  %v4403_v55 = vld [vmem:[#allocation6 + $0x22c] sm:$0xf] }
  0xe6   :  { %v3772_v43 = vld [vmem:[#allocation6 + $0x198] sm:$0xf]  ;;  %v3609_v23 = vor.u32 %v4343_v25, %v3606_v42  ;;  %v3849_v20 = vor.u32 %v4403_v55, %v3846_v18  ;;  %v3597_v62 = vor.u32 %v4340_v50, %v3594_v51  ;;  %v4381_v29 = vld [vmem:[#allocation6 + $0x178] sm:$0xf0]  ;;  %v4354_v42 = vld [vmem:[#allocation6 + $0xa0] sm:$0xf0] }
  0xe7   :  { %2255 = vmatpush.bf16.msra.mxu0 %v3629_v11  ;;  %v1364_v3 = vadd.f32 %v1363_v21, %v1351_v56  ;;  %v4376_v11 = vld [vmem:[#allocation6 + $0x154] sm:$0xf]  ;;  %v3796_v21 = vld [vmem:[#allocation6 + $0x1c8] sm:$0xf]  ;;  %v4383_v56 = vld [vmem:[#allocation6 + $0x188] sm:$0xf0] }
  0xe8   :  { %2268 = vmatpush.bf16.msra.mxu1 %v3725_v12  ;;  %v3738_v12 = vld [vmem:[#allocation6 + $0x15c] sm:$0xf0]  ;;  %v3797_v26 = vor.u32 %v4392_v22, %v3796_v21  ;;  %v3761_v59 = vor.u32 %v4383_v56, %v3760_v54  ;;  %v3666_v21 = vld [vmem:[#allocation6 + $0xcc] sm:$0xf0]  ;;  %v3648_v25 = vld [vmem:[#allocation6 + $0x98] sm:$0xf] }
  0xe9   :  { %2281 = vmatpush.bf16.msra.mxu2 %v3821_v1  ;;  %v4756_v14 = vpack.c.bf16 %v1364_v3, %v1364_v3  ;;  %v3741_v16 = vor.u32 %v4376_v11, %v3738_v12  ;;  %v4337_v1 = vld [vmem:[#allocation6 + $0x1c] sm:$0xf]  ;;  %v3660_v22 = vld [vmem:[#allocation6 + $0xb0] sm:$0xf]  ;;  %v4391_v51 = vld [vmem:[#allocation6 + $0x1cc] sm:$0xf] }
  0xea   :  { %v4361_v3 = vld [vmem:[#allocation6 + $0xdc] sm:$0xf]  ;;  %v4351_v56 = vld [vmem:[#allocation6 + $0x88] sm:$0xf0] }
  0xeb   :  { %2256 = vmatpush.bf16.msra.mxu0 %v3617_v17  ;;  %v1378_v60 = vpop.f32.mrf.mxu2  ;;  %v3630_v17 = vld [vmem:[#allocation6 + $0x84] sm:$0xf0]  ;;  %v4375_v55 = vld [vmem:[#allocation6 + $0x148] sm:$0xf0] }
  0xec   :  { %2269 = vmatpush.bf16.msra.mxu1 %v3713_v35  ;;  %v1391_v0 = vpop.f32.mrf.mxu3  ;;  %v4373_v35 = vld [vmem:[#allocation6 + $0x13c] sm:$0xf]  ;;  %v3633_v38 = vor.u32 %v4349_v19, %v3630_v17  ;;  %v4428_v19 = vld [vmem:[#allocation6 + $0x2f0] sm:$0xf0]  ;;  %v4358_v17 = vld [vmem:[#allocation6 + $0xc4] sm:$0xf] }
  0xed   :  { %2282 = vmatpush.bf16.msra.mxu2 %v3809_v13  ;;  %v3693_v0 = vor.u32 %v4364_v53, %v3690_v58  ;;  %v3570_v13 = vld [vmem:[#allocation6 + $0xc] sm:$0xf0]  ;;  %v3904_v53 = vld [vmem:[#allocation6 + $0x2a0] sm:$0xf] }
  0xef   :  { %2257 = vmatpush.bf16.msra.mxu0 %v3605_v28  ;;  %v3729_v28 = vor.u32 %v4373_v35, %v3726_v24  ;;  %v4357_v24 = vld [vmem:[#allocation6 + $0xb8] sm:$0xf0] }
  0xf0   :  { %2270 = vmatpush.bf16.msra.mxu1 %v3701_v30  ;;  %v3784_v30 = vld [vmem:[#allocation6 + $0x1b0] sm:$0xf] }
  0xf1   :  { %2283 = vmatpush.bf16.msra.mxu2 %v3797_v26  ;;  %v3785_v37 = vor.u32 %v4389_v31, %v3784_v30 }
  0xf3   :  { %2258 = vmatpush.bf16.msra.mxu0 %v3593_v41 }
  0xf4   :  { %2271 = vmatpush.bf16.msra.mxu1 %v3689_v44  ;;  %v4386_v44 = vld [vmem:[#allocation6 + $0x1a0] sm:$0xf0] }
  0xf5   :  { %2284 = vmatpush.bf16.msra.mxu2 %v3785_v37  ;;  %v3773_v49 = vor.u32 %v4386_v44, %v3772_v43  ;;  %v3669_v37 = vor.u32 %v4358_v17, %v3666_v21  ;;  %v4394_v43 = vld [vmem:[#allocation6 + $0x1e4] sm:$0xf]  ;;  %v3810_v44 = vld [vmem:[#allocation6 + $0x1ec] sm:$0xf0] }
  0xf7   :  { %2259 = vmatpush.bf16.msra.mxu0 %v3581_v52  ;;  %v3705_v52 = vor.u32 %v4367_v47, %v3702_v48  ;;  %v3813_v47 = vor.u32 %v4394_v43, %v3810_v44  ;;  %v3636_v48 = vld [vmem:[#allocation6 + $0x80] sm:$0xf]  ;;  %v4339_v43 = vld [vmem:[#allocation6 + $0x28] sm:$0xf0] }
  0xf8   :  { %2272 = vmatpush.bf16.msra.mxu1 %v3677_v57 }
  0xf9   :  { %2285 = vmatpush.bf16.msra.mxu2 %v3773_v49  ;;  %v3916_v49 = vld [vmem:[#allocation6 + $0x2b8] sm:$0xf] }
  0xfb   :  { %2260 = vmatpush.bf16.msra.mxu0 %v3569_v2  ;;  %v1402_v41 = vpop.f32.mrf.mxu0  ;;  %v3582_v2 = vld [vmem:[#allocation6 + $0x24] sm:$0xf0] }
  0xfc   :  { %2273 = vmatpush.bf16.msra.mxu1 %v3665_v4  ;;  %v1403_v45 = vadd.f32 %v1402_v41, %v1390_v32  ;;  %v1415_v46 = vpop.f32.mrf.mxu1  ;;  %v3585_v12 = vor.u32 %v4337_v1, %v3582_v2  ;;  %v3573_v32 = vor.u32 %v4334_v10, %v3570_v13  ;;  %v3720_v2 = vld [vmem:[#allocation6 + $0x128] sm:$0xf]  ;;  %v4385_v13 = vld [vmem:[#allocation6 + $0x19c] sm:$0xf] }
  0xfd   :  { %2286 = vmatpush.bf16.msra.mxu2 %v3761_v59  ;;  %v4419_v59 = vld [vmem:[#allocation6 + $0x2a8] sm:$0xf0] }
  0xfe   :  { %2261 = vmatmul.bf16.vlgmr.msra.gmra.mxu0 %v4756_v14  ;;  %v1416_v36 = vadd.f32 %v1415_v46, %v1403_v45  ;;  %v3744_v45 = vld [vmem:[#allocation6 + $0x158] sm:$0xf]  ;;  %v4378_v46 = vld [vmem:[#allocation6 + $0x160] sm:$0xf0]  ;;  %v3905_v18 = vor.u32 %v4419_v59, %v3904_v53  ;;  %v4360_v59 = vld [vmem:[#allocation6 + $0xd0] sm:$0xf0] }
  0xff   :  { %2305 = vmatpush.bf16.msrb.mxu0 %v3657_v5  ;;  %v3678_v5 = vld [vmem:[#allocation6 + $0xe4] sm:$0xf0]  ;;  %v3745_v54 = vor.u32 %v4378_v46, %v3744_v45  ;;  %v3684_v46 = vld [vmem:[#allocation6 + $0xe0] sm:$0xf] }
 0x100   :  { %2318 = vmatpush.bf16.msrb.mxu1 %v3753_v7  ;;  %v4400_v7 = vld [vmem:[#allocation6 + $0x214] sm:$0xf] }
 0x101   :  { %2331 = vmatpush.bf16.msrb.mxu2 %v3849_v20  ;;  %v3837_v11 = vor.u32 %v4400_v7, %v3834_v8  ;;  %v3637_v20 = vor.u32 %v4351_v56, %v3636_v48  ;;  %v3612_v7 = vld [vmem:[#allocation6 + $0x50] sm:$0xf]  ;;  %v4336_v56 = vld [vmem:[#allocation6 + $0x10] sm:$0xf0] }
 0x103   :  { %2306 = vmatpush.bf16.msrb.mxu0 %v3645_v15  ;;  %v1428_v57 = vpop.f32.mrf.mxu2  ;;  %v1404_v4 = vpop.f32.mrf.mxu0  ;;  %v3940_v15 = vld [vmem:[#allocation6 + $0x2e8] sm:$0xf] }
 0x104   :  { %2319 = vmatpush.bf16.msrb.mxu1 %v3741_v16  ;;  %v1429_v60 = vadd.f32 %v1428_v57, %v1416_v36  ;;  %v1441_v61 = vpop.f32.mrf.mxu3  ;;  %v1417_v6 = vpop.f32.mrf.mxu1  ;;  %v3681_v16 = vor.u32 %v4361_v3, %v3678_v5  ;;  %v3941_v35 = vor.u32 %v4428_v19, %v3940_v15  ;;  %v4422_v36 = vld [vmem:[#allocation6 + $0x2c0] sm:$0xf0]  ;;  %v3732_v57 = vld [vmem:[#allocation6 + $0x140] sm:$0xf]  ;;  %v4372_v3 = vld [vmem:[#allocation6 + $0x130] sm:$0xf0] }
 0x105   :  { %2332 = vmatpush.bf16.msrb.mxu2 %v3837_v11  ;;  %v3917_v50 = vor.u32 %v4422_v36, %v3916_v49  ;;  %v3892_v4 = vld [vmem:[#allocation6 + $0x288] sm:$0xf]  ;;  %v4416_v5 = vld [vmem:[#allocation6 + $0x290] sm:$0xf0]  ;;  %v3721_v10 = vor.u32 %v4372_v3, %v3720_v2  ;;  %v4345_v11 = vld [vmem:[#allocation6 + $0x58] sm:$0xf0] }
 0x106   :  { %v1442_v63 = vadd.f32 %v1441_v61, %v1429_v60  ;;  %2292 = vmatpush.bf16.msra.mxu3 %v3941_v35  ;;  %v4388_v60 = vld [vmem:[#allocation6 + $0x1b4] sm:$0xf]  ;;  %v3786_v61 = vld [vmem:[#allocation6 + $0x1bc] sm:$0xf0]  ;;  %v3893_v8 = vor.u32 %v4416_v5, %v3892_v4  ;;  %v3774_v15 = vld [vmem:[#allocation6 + $0x1a4] sm:$0xf0] }
 0x107   :  { %2307 = vmatpush.bf16.msrb.mxu0 %v3633_v38  ;;  %v4397_v38 = vld [vmem:[#allocation6 + $0x1fc] sm:$0xf]  ;;  %v3789_v1 = vor.u32 %v4388_v60, %v3786_v61  ;;  %v3708_v19 = vld [vmem:[#allocation6 + $0x110] sm:$0xf]  ;;  %v3777_v21 = vor.u32 %v4385_v13, %v3774_v15  ;;  %v3856_v49 = vld [vmem:[#allocation6 + $0x240] sm:$0xf] }
 0x108   :  { %2320 = vmatpush.bf16.msrb.mxu1 %v3729_v28  ;;  %v4761_v9 = vpack.c.bf16 %v1442_v63, %v1442_v63  ;;  %v3756_v28 = vld [vmem:[#allocation6 + $0x170] sm:$0xf]  ;;  %v3825_v31 = vor.u32 %v4397_v38, %v3822_v27  ;;  %v3624_v63 = vld [vmem:[#allocation6 + $0x68] sm:$0xf]  ;;  %v4413_v35 = vld [vmem:[#allocation6 + $0x278] sm:$0xf0] }
 0x109   :  { %v3757_v41 = vor.u32 %v4381_v29, %v3756_v28  ;;  %v4342_v28 = vld [vmem:[#allocation6 + $0x40] sm:$0xf0]  ;;  %v4407_v36 = vld [vmem:[#allocation6 + $0x248] sm:$0xf0]  ;;  %v3906_v5 = vld [vmem:[#allocation6 + $0x2ac] sm:$0xf0] }
 0x10a   :  { %2274 = vmatmul.bf16.vlgmr.msra.gmra.mxu1 %v4761_v9  ;;  %2333 = vmatpush.bf16.msrb.mxu2 %v3825_v31  ;;  %v4382_v29 = vld [vmem:[#allocation6 + $0x184] sm:$0xf]  ;;  %v3696_v31 = vld [vmem:[#allocation6 + $0xf8] sm:$0xf] }
 0x10b   :  { %2308 = vmatpush.bf16.msrb.mxu0 %v3621_v39  ;;  %v1430_v26 = vpop.f32.mrf.mxu2  ;;  %v3661_v39 = vor.u32 %v4357_v24, %v3660_v22  ;;  %v3880_v22 = vld [vmem:[#allocation6 + $0x270] sm:$0xf]  ;;  %v3613_v24 = vor.u32 %v4345_v11, %v3612_v7  ;;  %v4418_v4 = vld [vmem:[#allocation6 + $0x2a4] sm:$0xf]  ;;  %v3894_v11 = vld [vmem:[#allocation6 + $0x294] sm:$0xf0] }
 0x10c   :  { %2321 = vmatpush.bf16.msrb.mxu1 %v3717_v40  ;;  %v1443_v30 = vpop.f32.mrf.mxu3  ;;  %v3929_v40 = vor.u32 %v4425_v34, %v3928_v33  ;;  %v3600_v26 = vld [vmem:[#allocation6 + $0x38] sm:$0xf]  ;;  %v3881_v38 = vor.u32 %v4413_v35, %v3880_v22  ;;  %v3909_v7 = vor.u32 %v4418_v4, %v3906_v5 }
 0x10d   :  { %v3762_v30 = vld [vmem:[#allocation6 + $0x18c] sm:$0xf0]  ;;  %v3868_v34 = vld [vmem:[#allocation6 + $0x258] sm:$0xf] }
 0x10e   :  { %2293 = vmatpush.bf16.msra.mxu3 %v3929_v40  ;;  %2334 = vmatpush.bf16.msrb.mxu2 %v3813_v47  ;;  %v3765_v33 = vor.u32 %v4382_v29, %v3762_v30  ;;  %v4363_v47 = vld [vmem:[#allocation6 + $0xe8] sm:$0xf0] }
 0x10f   :  { %2309 = vmatpush.bf16.msrb.mxu0 %v3609_v23  ;;  %v3649_v23 = vor.u32 %v4354_v42, %v3648_v25  ;;  %v3588_v42 = vld [vmem:[#allocation6 + $0x20] sm:$0xf]  ;;  %v3685_v53 = vor.u32 %v4363_v47, %v3684_v46 }
 0x110   :  { %2322 = vmatpush.bf16.msrb.mxu1 %v3705_v52  ;;  %v3798_v52 = vld [vmem:[#allocation6 + $0x1d4] sm:$0xf0] }
 0x111   :  { %v3801_v58 = vor.u32 %v4391_v51, %v3798_v52  ;;  %v3857_v51 = vor.u32 %v4407_v36, %v3856_v49  ;;  %v3942_v52 = vld [vmem:[#allocation6 + $0x2f4] sm:$0xf0]  ;;  %v4393_v49 = vld [vmem:[#allocation6 + $0x1d8] sm:$0xf0] }
 0x112   :  { %2294 = vmatpush.bf16.msra.mxu3 %v3917_v50  ;;  %v3589_v50 = vor.u32 %v4339_v43, %v3588_v42  ;;  %v3816_v43 = vld [vmem:[#allocation6 + $0x1e8] sm:$0xf] }
 0x113   :  { %2310 = vmatpush.bf16.msrb.mxu0 %v3597_v62  ;;  %v3733_v62 = vor.u32 %v4375_v55, %v3732_v57  ;;  %2335 = vmatpush.bf16.msrb.mxu2 %v3801_v58  ;;  %v3672_v58 = vld [vmem:[#allocation6 + $0xc8] sm:$0xf]  ;;  %v4424_v55 = vld [vmem:[#allocation6 + $0x2d4] sm:$0xf] }
 0x114   :  { %2323 = vmatpush.bf16.msrb.mxu1 %v3693_v0  ;;  %v4348_v0 = vld [vmem:[#allocation6 + $0x70] sm:$0xf0] }
 0x115   :  { %v3625_v6 = vor.u32 %v4348_v0, %v3624_v63  ;;  %v4421_v0 = vld [vmem:[#allocation6 + $0x2bc] sm:$0xf] }
 0x116   :  { %2295 = vmatpush.bf16.msra.mxu3 %v3905_v18  ;;  %v3930_v18 = vld [vmem:[#allocation6 + $0x2dc] sm:$0xf0] }
 0x117   :  { %2311 = vmatpush.bf16.msrb.mxu0 %v3585_v12  ;;  %2336 = vmatpush.bf16.msrb.mxu2 %v3789_v1  ;;  %v3918_v1 = vld [vmem:[#allocation6 + $0x2c4] sm:$0xf0] }
 0x118   :  { %2324 = vmatpush.bf16.msrb.mxu1 %v3681_v16  ;;  %v4369_v16 = vld [vmem:[#allocation6 + $0x118] sm:$0xf0]  ;;  %v3921_v3 = vor.u32 %v4421_v0, %v3918_v1  ;;  %v3948_v1 = vld [vmem:[#allocation6 + $0x2f0] sm:$0xf] }
 0x119   :  { %v3709_v27 = vor.u32 %v4369_v16, %v3708_v19  ;;  %v3882_v19 = vld [vmem:[#allocation6 + $0x27c] sm:$0xf0] }
 0x11a   :  { %2296 = vmatpush.bf16.msra.mxu3 %v3893_v8 }
 0x11b   :  { %2312 = vmatpush.bf16.msrb.mxu0 %v3573_v32  ;;  %v4765_v12 = vpop.f32.mrf.mxu0  ;;  %2337 = vmatpush.bf16.msrb.mxu2 %v3777_v21  ;;  %v4366_v32 = vld [vmem:[#allocation6 + $0x100] sm:$0xf0]  ;;  %v3852_v21 = vld [vmem:[#allocation6 + $0x230] sm:$0xf] }
 0x11c   :  { %2325 = vmatpush.bf16.msrb.mxu1 %v3669_v37  ;;  %v4768_v17 = vpop.f32.mrf.mxu1  ;;  %v4410_v37 = vld [vmem:[#allocation6 + $0x260] sm:$0xf0] }
 0x11d   :  { %v3869_v40 = vor.u32 %v4410_v37, %v3868_v34  ;;  %v1468_v2 = vadd.f32 %v4768_v17, %v4765_v12  ;;  %v4412_v12 = vld [vmem:[#allocation6 + $0x274] sm:$0xf]  ;;  %v3828_v34 = vld [vmem:[#allocation6 + $0x200] sm:$0xf]  ;;  %v4399_v37 = vld [vmem:[#allocation6 + $0x208] sm:$0xf0] }
 0x11e   :  { %2313 = vmatmul.bf16.vlgmr.msrb.gmra.mxu0 %v4756_v14  ;;  %2297 = vmatpush.bf16.msra.mxu3 %v3881_v38  ;;  %v3885_v22 = vor.u32 %v4412_v12, %v3882_v19  ;;  %v4402_v38 = vld [vmem:[#allocation6 + $0x220] sm:$0xf0]  ;;  %v3829_v42 = vor.u32 %v4399_v37, %v3828_v34  ;;  %v4423_v12 = vld [vmem:[#allocation6 + $0x2c8] sm:$0xf0] }
 0x11f   :  { %2357 = vmatpush.bf16.msra.mxu0 %v3661_v39  ;;  %2326 = vmatmul.bf16.vlgmr.msrb.gmra.mxu1 %v4761_v9  ;;  %v3601_v39 = vor.u32 %v4342_v28, %v3600_v26  ;;  %v3840_v26 = vld [vmem:[#allocation6 + $0x218] sm:$0xf]  ;;  %v3870_v28 = vld [vmem:[#allocation6 + $0x264] sm:$0xf0] }
 0x120   :  { %2370 = vmatpush.bf16.msra.mxu1 %v3757_v41  ;;  %v3697_v41 = vor.u32 %v4366_v32, %v3696_v31  ;;  %2338 = vmatpush.bf16.msrb.mxu2 %v3765_v33  ;;  %v3841_v31 = vor.u32 %v4402_v38, %v3840_v26  ;;  %v4414_v26 = vld [vmem:[#allocation6 + $0x280] sm:$0xf0] }
 0x121   :  { %v1733_v34 = vld [vmem:[#allocation10] ss:$2 sm:$0x7] }
 0x122   :  { %2298 = vmatpush.bf16.msra.mxu3 %v3869_v40  ;;  %v3858_v40 = vld [vmem:[#allocation6 + $0x24c] sm:$0xf0]  ;;  %v1735_v37 = vperm.slane %v1733_v34, 0 }
 0x123   :  { %2358 = vmatpush.bf16.msra.mxu0 %v3649_v23  ;;  %v1480_v25 = vpop.f32.mrf.mxu2  ;;  %v1456_v44 = vpop.f32.mrf.mxu0  ;;  %v4427_v23 = vld [vmem:[#allocation6 + $0x2ec] sm:$0xf] }
 0x124   :  { %2371 = vmatpush.bf16.msra.mxu1 %v3745_v54  ;;  %v1493_v45 = vpop.f32.mrf.mxu3  ;;  %v1469_v48 = vpop.f32.mrf.mxu1  ;;  %v3576_v54 = vld [vmem:[#allocation6 + $0x8] sm:$0xf]  ;;  %v3945_v57 = vor.u32 %v4427_v23, %v3942_v52  ;;  %v4396_v44 = vld [vmem:[#allocation6 + $0x1f0] sm:$0xf0]  ;;  %v3792_v23 = vld [vmem:[#allocation6 + $0x1b8] sm:$0xf] }
 0x125   :  { %v3577_v60 = vor.u32 %v4336_v56, %v3576_v54  ;;  %v3817_v46 = vor.u32 %v4396_v44, %v3816_v43  ;;  %v3804_v48 = vld [vmem:[#allocation6 + $0x1d0] sm:$0xf]  ;;  %v3780_v52 = vld [vmem:[#allocation6 + $0x1a0] sm:$0xf]  ;;  %v1736_v43 = vperm.slane %v1733_v34, 1 }
 0x126   :  { %2299 = vmatpush.bf16.msra.mxu3 %v3857_v51  ;;  %v3805_v36 = vor.u32 %v4393_v49, %v3804_v48  ;;  %v1737_v49 = vperm.slane %v1733_v34, 2  ;;  %v3968_v34 = vld [vmem:[#allocation7 + $0x20] sm:$0xf] }
 0x127   :  { %2359 = vmatpush.bf16.msra.mxu0 %v3637_v20  ;;  %v3933_v20 = vor.u32 %v4424_v55, %v3930_v18 }
 0x128   :  { %2372 = vmatpush.bf16.msra.mxu1 %v3733_v62  ;;  %v3673_v62 = vor.u32 %v4360_v59, %v3672_v58  ;;  %v3768_v58 = vld [vmem:[#allocation6 + $0x188] sm:$0xf]  ;;  %v4384_v59 = vld [vmem:[#allocation6 + $0x190] sm:$0xf0] }
 0x12a   :  { %2344 = vmatpush.bf16.msrb.mxu3 %v3945_v57 }
 0x12b   :  { %2360 = vmatpush.bf16.msra.mxu0 %v3625_v6  ;;  %v1482_v61 = vpop.f32.mrf.mxu2  ;;  %v1481_v6 = vadd.f32 %v1480_v25, %v1468_v2  ;;  %v4406_v25 = vld [vmem:[#allocation6 + $0x244] sm:$0xf]  ;;  %v4429_v2 = vld [vmem:[#allocation6 + $0x2f8] sm:$0xf0] }
 0x12c   :  { %2373 = vmatpush.bf16.msra.mxu1 %v3721_v10  ;;  %v1495_v63 = vpop.f32.mrf.mxu3  ;;  %v4415_v10 = vld [vmem:[#allocation6 + $0x28c] sm:$0xf]  ;;  %v3949_v5 = vor.u32 %v4429_v2, %v3948_v1  ;;  %v3992_v1 = vld [vmem:[#allocation7 + $0x50] sm:$0xf]  ;;  %v4441_v2 = vld [vmem:[#allocation7 + $0x54] sm:$0xf0] }
 0x12d   :  { %v1494_v8 = vadd.f32 %v1493_v45, %v1481_v6  ;;  %v3897_v13 = vor.u32 %v4415_v10, %v3894_v11 }
 0x12e   :  { %2345 = vmatpush.bf16.msrb.mxu3 %v3933_v20 }
 0x12f   :  { %2361 = vmatpush.bf16.msra.mxu0 %v3613_v24 }
 0x130   :  { %2374 = vmatpush.bf16.msra.mxu1 %v3709_v27  ;;  %v4409_v27 = vld [vmem:[#allocation6 + $0x25c] sm:$0xf] }
 0x131   :  { %v3873_v29 = vor.u32 %v4409_v27, %v3870_v28  ;;  %v3876_v27 = vld [vmem:[#allocation6 + $0x260] sm:$0xf]  ;;  %v4411_v28 = vld [vmem:[#allocation6 + $0x268] sm:$0xf0] }
 0x132   :  { %2346 = vmatpush.bf16.msrb.mxu3 %v3921_v3 }
 0x133   :  { %2362 = vmatpush.bf16.msra.mxu0 %v3601_v39 }
 0x134   :  { %2375 = vmatpush.bf16.msra.mxu1 %v3697_v41  ;;  %v3861_v41 = vor.u32 %v4406_v25, %v3858_v40 }
 0x136   :  { %2347 = vmatpush.bf16.msrb.mxu3 %v3909_v7  ;;  %v3936_v7 = vld [vmem:[#allocation6 + $0x2d8] sm:$0xf] }
 0x137   :  { %2363 = vmatpush.bf16.msra.mxu0 %v3589_v50  ;;  %v4390_v50 = vld [vmem:[#allocation6 + $0x1c0] sm:$0xf0] }
 0x138   :  { %2376 = vmatpush.bf16.msra.mxu1 %v3685_v53  ;;  %v3793_v51 = vor.u32 %v4390_v50, %v3792_v23  ;;  %v4387_v53 = vld [vmem:[#allocation6 + $0x1a8] sm:$0xf0]  ;;  %v4445_v23 = vld [vmem:[#allocation7 + $0x74] sm:$0xf0]  ;;  %v4444_v50 = vld [vmem:[#allocation7 + $0x74] sm:$0xf] }
 0x139   :  { %v3781_v54 = vor.u32 %v4387_v53, %v3780_v52  ;;  %v4010_v52 = vld [vmem:[#allocation7 + $0x78] sm:$0xf0]  ;;  %v4000_v53 = vld [vmem:[#allocation7 + $0x60] sm:$0xf] }
 0x13a   :  { %2348 = vmatpush.bf16.msrb.mxu3 %v3897_v13 }
 0x13b   :  { %2364 = vmatpush.bf16.msra.mxu0 %v3577_v60  ;;  %v1506_v15 = vpop.f32.mrf.mxu0  ;;  %v3769_v60 = vor.u32 %v4384_v59, %v3768_v58  ;;  %v4002_v58 = vld [vmem:[#allocation7 + $0x68] sm:$0xf0]  ;;  %v4072_v59 = vld [vmem:[#allocation7 + $0xf0] sm:$0xf] }
 0x13c   :  { %2377 = vmatpush.bf16.msra.mxu1 %v3673_v62  ;;  %v1507_v16 = vadd.f32 %v1506_v15, %v1494_v8  ;;  %v1519_v17 = vpop.f32.mrf.mxu1  ;;  %v4426_v8 = vld [vmem:[#allocation6 + $0x2e0] sm:$0xf0]  ;;  %v3924_v15 = vld [vmem:[#allocation6 + $0x2c0] sm:$0xf] }
 0x13d   :  { %v3937_v11 = vor.u32 %v4426_v8, %v3936_v7  ;;  %v3925_v19 = vor.u32 %v4423_v12, %v3924_v15  ;;  %v4459_v7 = vld [vmem:[#allocation7 + $0xe4] sm:$0xf0]  ;;  %v4438_v15 = vld [vmem:[#allocation7 + $0x44] sm:$0xf] }
 0x13e   :  { %2365 = vmatmul.bf16.vlgmr.msra.gmra.mxu0 %v4756_v14  ;;  %v4405_v14 = vld [vmem:[#allocation6 + $0x238] sm:$0xf0]  ;;  %v1520_v35 = vadd.f32 %v1519_v17, %v1507_v16  ;;  %2349 = vmatpush.bf16.msrb.mxu3 %v3885_v22  ;;  %v3912_v16 = vld [vmem:[#allocation6 + $0x2a8] sm:$0xf]  ;;  %v4420_v17 = vld [vmem:[#allocation6 + $0x2b0] sm:$0xf0] }
 0x13f   :  { %2378 = vmatmul.bf16.vlgmr.msra.gmra.mxu1 %v4761_v9  ;;  %v3853_v24 = vor.u32 %v4405_v14, %v3852_v21  ;;  %v3913_v21 = vor.u32 %v4420_v17, %v3912_v16  ;;  %v3900_v14 = vld [vmem:[#allocation6 + $0x290] sm:$0xf]  ;;  %v4417_v22 = vld [vmem:[#allocation6 + $0x298] sm:$0xf0]  ;;  %v3986_v16 = vld [vmem:[#allocation7 + $0x48] sm:$0xf0] }
 0x140   :  { %v1603_v9 = vpack.c.bf16 %v1520_v35, %v1520_v35  ;;  %v3901_v35 = vor.u32 %v4417_v22, %v3900_v14  ;;  %v4056_v17 = vld [vmem:[#allocation7 + $0xd0] sm:$0xf]  ;;  %v3989_v22 = vor.u32 %v4438_v15, %v3986_v16 }
 0x142   :  { %2287 = vmatmul.bf16.vlgmr.msra.gmra.mxu2 %v1603_v9  ;;  %2350 = vmatpush.bf16.msrb.mxu3 %v3873_v29  ;;  %v3877_v29 = vor.u32 %v4411_v28, %v3876_v27  ;;  %v3978_v27 = vld [vmem:[#allocation7 + $0x38] sm:$0xf0]  ;;  %v4460_v28 = vld [vmem:[#allocation7 + $0xf4] sm:$0xf] }
 0x143   :  { %v1532_v30 = vpop.f32.mrf.mxu2  ;;  %2383 = vmatpush.bf16.msra.mxu2 %v3853_v24  ;;  %v1508_v33 = vpop.f32.mrf.mxu0  ;;  %v3888_v24 = vld [vmem:[#allocation6 + $0x278] sm:$0xf] }
 0x144   :  { %v1545_v32 = vpop.f32.mrf.mxu3  ;;  %v1521_v39 = vpop.f32.mrf.mxu1  ;;  %v3889_v38 = vor.u32 %v4414_v26, %v3888_v24  ;;  %v3976_v24 = vld [vmem:[#allocation7 + $0x30] sm:$0xf]  ;;  %v4437_v26 = vld [vmem:[#allocation7 + $0x34] sm:$0xf0] }
 0x145   :  { %v1546_v56 = vadd.f32 %v1545_v32, %v1532_v30  ;;  %v3864_v30 = vld [vmem:[#allocation6 + $0x248] sm:$0xf] }
 0x146   :  { %2351 = vmatpush.bf16.msrb.mxu3 %v3861_v41 }
 0x147   :  { %2384 = vmatpush.bf16.msra.mxu2 %v3841_v31  ;;  %v4408_v31 = vld [vmem:[#allocation6 + $0x250] sm:$0xf0] }
 0x148   :  { %v3865_v33 = vor.u32 %v4408_v31, %v3864_v30 }
 0x14b   :  { %v1534_v45 = vpop.f32.mrf.mxu2  ;;  %2385 = vmatpush.bf16.msra.mxu2 %v3829_v42 }
 0x14c   :  { %v1547_v47 = vpop.f32.mrf.mxu3 }
 0x14f   :  { %2386 = vmatpush.bf16.msra.mxu2 %v3817_v46 }
 0x152   :  { %2339 = vmatmul.bf16.vlgmr.msrb.gmra.mxu2 %v1603_v9 }
 0x153   :  { %2387 = vmatpush.bf16.msra.mxu2 %v3805_v36  ;;  %v4008_v36 = vld [vmem:[#allocation7 + $0x70] sm:$0xf] }
 0x157   :  { %2388 = vmatpush.bf16.msra.mxu2 %v3793_v51  ;;  %v4009_v51 = vor.u32 %v4445_v23, %v4008_v36 }
 0x159   :  { %2611 = vmatpush.bf16.msrb.mxu0 %v4009_v51  ;;  %v4433_v51 = vld [vmem:[#allocation7 + $0x14] sm:$0xf0] }
 0x15b   :  { %v1558_v57 = vpop.f32.mrf.mxu0  ;;  %2389 = vmatpush.bf16.msra.mxu2 %v3781_v54  ;;  %v4443_v54 = vld [vmem:[#allocation7 + $0x64] sm:$0xf0] }
 0x15c   :  { %v1571_v55 = vpop.f32.mrf.mxu1  ;;  %v1559_v18 = vadd.f32 %v1558_v57, %v1546_v56  ;;  %v4013_v56 = vor.u32 %v4444_v50, %v4010_v52  ;;  %v4442_v57 = vld [vmem:[#allocation7 + $0x64] sm:$0xf]  ;;  %v3960_v50 = vld [vmem:[#allocation7 + $0x10] sm:$0xf]  ;;  %v4432_v52 = vld [vmem:[#allocation7 + $0x14] sm:$0xf] }
 0x15e   :  { %v1572_v61 = vadd.f32 %v1571_v55, %v1559_v18  ;;  %v4001_v18 = vor.u32 %v4443_v54, %v4000_v53  ;;  %v3961_v53 = vor.u32 %v4433_v51, %v3960_v50  ;;  %v3962_v54 = vld [vmem:[#allocation7 + $0x18] sm:$0xf0]  ;;  %v4471_v50 = vld [vmem:[#allocation9 + $0x44] sm:$0xf0]  ;;  %v4470_v51 = vld [vmem:[#allocation9 + $0x44] sm:$0xf] }
 0x15f   :  { %2390 = vmatpush.bf16.msra.mxu2 %v3769_v60  ;;  %v4461_v60 = vld [vmem:[#allocation7 + $0xf4] sm:$0xf0] }
 0x160   :  { %2612 = vmatpush.bf16.msrb.mxu0 %v4001_v18  ;;  %v4451_v18 = vld [vmem:[#allocation7 + $0xa4] sm:$0xf0] }
 0x162   :  { %2391 = vmatmul.bf16.vlgmr.msra.gmra.mxu2 %v1603_v9 }
 0x163   :  { %v1584_v20 = vpop.f32.mrf.mxu2  ;;  %v1560_v0 = vpop.f32.mrf.mxu0  ;;  %2637 = vmatpush.bf16.msrb.mxu2 %v4013_v56  ;;  %v4456_v56 = vld [vmem:[#allocation7 + $0xd4] sm:$0xf] }
 0x164   :  { %v1585_v62 = vadd.f32 %v1584_v20, %v1572_v61  ;;  %v1597_v63 = vpop.f32.mrf.mxu3  ;;  %v1573_v3 = vpop.f32.mrf.mxu1 }
 0x165   :  { %v4440_v3 = vld [vmem:[#allocation7 + $0x54] sm:$0xf] }
 0x166   :  { %v1598_v4 = vadd.f32 %v1597_v63, %v1585_v62  ;;  %v4005_v62 = vor.u32 %v4442_v57, %v4002_v58  ;;  %v4073_v63 = vor.u32 %v4461_v60, %v4072_v59  ;;  %v4058_v57 = vld [vmem:[#allocation7 + $0xd8] sm:$0xf0]  ;;  %v3965_v58 = vor.u32 %v4432_v52, %v3962_v54 }
 0x167   :  { %v4061_v59 = vor.u32 %v4456_v56, %v4058_v57  ;;  %v4104_v57 = vld [vmem:[#allocation9 + $0x30] sm:$0xf] }
 0x168   :  { %v1604_v6 = vpack.c.bf16 %v1598_v4, %v1598_v4  ;;  %2624 = vmatpush.bf16.msrb.mxu1 %v4073_v63  ;;  %2638 = vmatpush.bf16.msrb.mxu2 %v4005_v62  ;;  %v3993_v4 = vor.u32 %v4441_v2, %v3992_v1  ;;  %v4430_v62 = vld [vmem:[#allocation7 + $0x4] sm:$0xf]  ;;  %v3954_v1 = vld [vmem:[#allocation7 + $0x8] sm:$0xf0] }
 0x169   :  { %v4454_v2 = vld [vmem:[#allocation7 + $0xc4] sm:$0xf] }
 0x16a   :  { %2300 = vmatmul.bf16.vlgmr.msra.gmra.mxu3 %v1604_v6  ;;  %2613 = vmatpush.bf16.msrb.mxu0 %v3993_v4  ;;  %v3957_v4 = vor.u32 %v4430_v62, %v3954_v1  ;;  %v4466_v62 = vld [vmem:[#allocation9 + $0x24] sm:$0xf]  ;;  %v4098_v1 = vld [vmem:[#allocation9 + $0x28] sm:$0xf0] }
 0x16b   :  { %v1586_v10 = vpop.f32.mrf.mxu2  ;;  %2396 = vmatpush.bf16.msra.mxu3 %v3949_v5  ;;  %v3994_v5 = vld [vmem:[#allocation7 + $0x58] sm:$0xf0] }
 0x16c   :  { %v1599_v13 = vpop.f32.mrf.mxu3  ;;  %v3997_v8 = vor.u32 %v4440_v3, %v3994_v5  ;;  %v4050_v3 = vld [vmem:[#allocation7 + $0xc8] sm:$0xf0] }
 0x16d   :  { %v4439_v13 = vld [vmem:[#allocation7 + $0x44] sm:$0xf0]  ;;  %v4053_v5 = vor.u32 %v4454_v2, %v4050_v3  ;;  %v4101_v2 = vor.u32 %v4466_v62, %v4098_v1 }
 0x16e   :  { %2639 = vmatpush.bf16.msrb.mxu2 %v3997_v8 }
 0x16f   :  { %2397 = vmatpush.bf16.msra.mxu3 %v3937_v11  ;;  %v3984_v11 = vld [vmem:[#allocation7 + $0x40] sm:$0xf] }
 0x172   :  { %2640 = vmatpush.bf16.msrb.mxu2 %v3989_v22 }
 0x173   :  { %2398 = vmatpush.bf16.msra.mxu3 %v3925_v19  ;;  %v3985_v19 = vor.u32 %v4439_v13, %v3984_v11  ;;  %v4452_v11 = vld [vmem:[#allocation7 + $0xb4] sm:$0xf]  ;;  %v4042_v13 = vld [vmem:[#allocation7 + $0xb8] sm:$0xf0] }
 0x174   :  { %v4045_v15 = vor.u32 %v4452_v11, %v4042_v13 }
 0x175   :  { %2614 = vmatpush.bf16.msrb.mxu0 %v3985_v19  ;;  %v4447_v19 = vld [vmem:[#allocation7 + $0x84] sm:$0xf0] }
 0x177   :  { %2399 = vmatpush.bf16.msra.mxu3 %v3913_v21  ;;  %v4457_v21 = vld [vmem:[#allocation7 + $0xd4] sm:$0xf0] }
 0x17a   :  { %2352 = vmatmul.bf16.vlgmr.msrb.gmra.mxu3 %v1604_v6 }
 0x17b   :  { %v2262_v9 = vpop.f32.mrf.mxu0  ;;  %2400 = vmatpush.bf16.msra.mxu3 %v3901_v35  ;;  %v4057_v35 = vor.u32 %v4457_v21, %v4056_v17  ;;  %v4136_v17 = vld [vmem:[#allocation9 + $0x70] sm:$0xf]  ;;  %v4477_v21 = vld [vmem:[#allocation9 + $0x74] sm:$0xf0] }
 0x17c   :  { %v2263_v39 = vadd.f32 %v2262_v9, %v1735_v37  ;;  %v4436_v9 = vld [vmem:[#allocation7 + $0x34] sm:$0xf]  ;;  %v4137_v22 = vor.u32 %v4477_v21, %v4136_v17 }
 0x17d   :  { %v3981_v30 = vor.u32 %v4436_v9, %v3978_v27  ;;  %v4034_v9 = vld [vmem:[#allocation7 + $0xa8] sm:$0xf0] }
 0x17f   :  { %2401 = vmatpush.bf16.msra.mxu3 %v3889_v38  ;;  %v3977_v38 = vor.u32 %v4437_v26, %v3976_v24  ;;  %2641 = vmatpush.bf16.msrb.mxu2 %v3981_v30  ;;  %v4450_v26 = vld [vmem:[#allocation7 + $0xa4] sm:$0xf]  ;;  %v4130_v30 = vld [vmem:[#allocation9 + $0x68] sm:$0xf0] }
 0x180   :  { %v4037_v27 = vor.u32 %v4450_v26, %v4034_v9 }
 0x181   :  { %2615 = vmatpush.bf16.msrb.mxu0 %v3977_v38  ;;  %v4128_v38 = vld [vmem:[#allocation9 + $0x60] sm:$0xf] }
 0x183   :  { %v2264_v32 = vpop.f32.mrf.mxu0  ;;  %2402 = vmatpush.bf16.msra.mxu3 %v3877_v29  ;;  %v4074_v29 = vld [vmem:[#allocation7 + $0xf8] sm:$0xf0] }
 0x184   :  { %v4077_v31 = vor.u32 %v4460_v28, %v4074_v29  ;;  %v4048_v32 = vld [vmem:[#allocation7 + $0xc0] sm:$0xf]  ;;  %v4475_v28 = vld [vmem:[#allocation9 + $0x64] sm:$0xf0]  ;;  %v4474_v29 = vld [vmem:[#allocation9 + $0x64] sm:$0xf] }
 0x187   :  { %2403 = vmatpush.bf16.msra.mxu3 %v3865_v33  ;;  %v2275_v25 = vpop.f32.mrf.mxu1  ;;  %v4455_v33 = vld [vmem:[#allocation7 + $0xc4] sm:$0xf0] }
 0x188   :  { %v4774_v40 = vadd.f32 %v2275_v25, %v2263_v39  ;;  %v4049_v37 = vor.u32 %v4455_v33, %v4048_v32  ;;  %v4435_v39 = vld [vmem:[#allocation7 + $0x24] sm:$0xf0]  ;;  %v4434_v25 = vld [vmem:[#allocation7 + $0x24] sm:$0xf]  ;;  %v4133_v32 = vor.u32 %v4474_v29, %v4130_v30  ;;  %v4448_v33 = vld [vmem:[#allocation7 + $0x94] sm:$0xf] }
 0x18a   :  { %2404 = vmatmul.bf16.vlgmr.msra.gmra.mxu3 %v1604_v6  ;;  %v4064_v6 = vld [vmem:[#allocation7 + $0xe0] sm:$0xf] }
 0x18b   :  { %v4065_v10 = vor.u32 %v4459_v7, %v4064_v6  ;;  %2650 = vmatpush.bf16.msrb.mxu3 %v4077_v31  ;;  %v4024_v6 = vld [vmem:[#allocation7 + $0x90] sm:$0xf]  ;;  %v4449_v7 = vld [vmem:[#allocation7 + $0x94] sm:$0xf0]  ;;  %v4129_v31 = vor.u32 %v4475_v28, %v4128_v38 }
 0x18c   :  { %v4025_v8 = vor.u32 %v4449_v7, %v4024_v6  ;;  %v4464_v6 = vld [vmem:[#allocation9 + $0x14] sm:$0xf] }
 0x18d   :  { %2625 = vmatpush.bf16.msrb.mxu1 %v4065_v10 }
 0x18f   :  { %v2277_v41 = vpop.f32.mrf.mxu1 }
 0x190   :  { %v3970_v41 = vld [vmem:[#allocation7 + $0x28] sm:$0xf0] }
 0x191   :  { %2626 = vmatpush.bf16.msrb.mxu1 %v4057_v35  ;;  %v4138_v35 = vld [vmem:[#allocation9 + $0x78] sm:$0xf0] }
 0x195   :  { %2627 = vmatpush.bf16.msrb.mxu1 %v4049_v37 }
 0x19b   :  { %v2314_v42 = vpop.f32.mrf.mxu0 }
 0x19c   :  { %v2315_v44 = vadd.f32 %v2314_v42, %v1736_v43  ;;  %v2327_v46 = vpop.f32.mrf.mxu1  ;;  %v3969_v42 = vor.u32 %v4435_v39, %v3968_v34  ;;  %v3973_v43 = vor.u32 %v4434_v25, %v3970_v41  ;;  %v4026_v34 = vld [vmem:[#allocation7 + $0x98] sm:$0xf0]  ;;  %v4120_v25 = vld [vmem:[#allocation9 + $0x50] sm:$0xf]  ;;  %v4473_v41 = vld [vmem:[#allocation9 + $0x54] sm:$0xf0] }
 0x19d   :  { %v4029_v39 = vor.u32 %v4448_v33, %v4026_v34 }
 0x19e   :  { %v4776_v47 = vadd.f32 %v2327_v46, %v2315_v44  ;;  %v4458_v44 = vld [vmem:[#allocation7 + $0xe4] sm:$0xf]  ;;  %v4040_v46 = vld [vmem:[#allocation7 + $0xb0] sm:$0xf]  ;;  %2616 = vmatpush.bf16.msrb.mxu0 %v3969_v42  ;;  %2642 = vmatpush.bf16.msrb.mxu2 %v3973_v43  ;;  %v4472_v42 = vld [vmem:[#allocation9 + $0x54] sm:$0xf]  ;;  %v4121_v43 = vor.u32 %v4473_v41, %v4120_v25 }
 0x19f   :  { %v2445_v41 = vld [vmem:[#allocation10 + $0x1] ss:$2 sm:$0x3] }
 0x1a2   :  { %2617 = vmatpush.bf16.msrb.mxu0 %v3961_v53  ;;  %2643 = vmatpush.bf16.msrb.mxu2 %v3965_v58  ;;  %v4114_v53 = vld [vmem:[#allocation9 + $0x48] sm:$0xf0]  ;;  %v4469_v58 = vld [vmem:[#allocation9 + $0x34] sm:$0xf0] }
 0x1a3   :  { %v2316_v45 = vpop.f32.mrf.mxu0  ;;  %v4117_v56 = vor.u32 %v4470_v51, %v4114_v53 }
 0x1a4   :  { %v2329_v48 = vpop.f32.mrf.mxu1  ;;  %v4066_v45 = vld [vmem:[#allocation7 + $0xe8] sm:$0xf0] }
 0x1a5   :  { %v4069_v48 = vor.u32 %v4458_v44, %v4066_v45  ;;  %v4122_v44 = vld [vmem:[#allocation9 + $0x58] sm:$0xf0] }
 0x1a6   :  { %2644 = vmatpush.bf16.msrb.mxu2 %v3957_v4  ;;  %v4125_v45 = vor.u32 %v4472_v42, %v4122_v44  ;;  %v4088_v4 = vld [vmem:[#allocation9 + $0x10] sm:$0xf]  ;;  %v2448_v44 = vperm.slane %v2445_v41, 1 }
 0x1a7   :  { %2651 = vmatpush.bf16.msrb.mxu3 %v4069_v48  ;;  %v4018_v48 = vld [vmem:[#allocation7 + $0x88] sm:$0xf0] }
 0x1ab   :  { %2652 = vmatpush.bf16.msrb.mxu3 %v4061_v59  ;;  %v4468_v59 = vld [vmem:[#allocation9 + $0x34] sm:$0xf] }
 0x1af   :  { %2653 = vmatpush.bf16.msrb.mxu3 %v4053_v5  ;;  %v4465_v5 = vld [vmem:[#allocation9 + $0x14] sm:$0xf0] }
 0x1b3   :  { %2654 = vmatpush.bf16.msrb.mxu3 %v4045_v15 }
 0x1b7   :  { %2655 = vmatpush.bf16.msrb.mxu3 %v4037_v27 }
 0x1bb   :  { %v2366_v55 = vpop.f32.mrf.mxu0  ;;  %2656 = vmatpush.bf16.msrb.mxu3 %v4029_v39 }
 0x1bc   :  { %v2367_v61 = vadd.f32 %v2366_v55, %v1737_v49  ;;  %v2379_v20 = vpop.f32.mrf.mxu1  ;;  %v4453_v49 = vld [vmem:[#allocation7 + $0xb4] sm:$0xf0]  ;;  %v4032_v55 = vld [vmem:[#allocation7 + $0xa0] sm:$0xf] }
 0x1bd   :  { %v4041_v36 = vor.u32 %v4453_v49, %v4040_v46  ;;  %v4033_v60 = vor.u32 %v4451_v18, %v4032_v55  ;;  %v4446_v46 = vld [vmem:[#allocation7 + $0x84] sm:$0xf]  ;;  %v4105_v55 = vor.u32 %v4469_v58, %v4104_v57  ;;  %v4106_v18 = vld [vmem:[#allocation9 + $0x38] sm:$0xf0] }
 0x1be   :  { %v4778_v0 = vadd.f32 %v2379_v20, %v2367_v61  ;;  %v3952_v61 = vld [vmem:[#allocation7] sm:$0xf]  ;;  %v4431_v20 = vld [vmem:[#allocation7 + $0x4] sm:$0xf0]  ;;  %v4021_v49 = vor.u32 %v4446_v46, %v4018_v48 }
 0x1bf   :  { %2628 = vmatpush.bf16.msrb.mxu1 %v4041_v36  ;;  %v3953_v63 = vor.u32 %v4431_v20, %v3952_v61  ;;  %v4112_v36 = vld [vmem:[#allocation9 + $0x40] sm:$0xf]  ;;  %v4467_v20 = vld [vmem:[#allocation9 + $0x24] sm:$0xf0] }
 0x1c0   :  { %v4113_v52 = vor.u32 %v4471_v50, %v4112_v36  ;;  %2657 = vmatpush.bf16.msrb.mxu3 %v4021_v49  ;;  %v4096_v61 = vld [vmem:[#allocation9 + $0x20] sm:$0xf] }
 0x1c1   :  { %2618 = vmatpush.bf16.msrb.mxu0 %v3953_v63  ;;  %v4097_v63 = vor.u32 %v4467_v20, %v4096_v61 }
 0x1c3   :  { %v2368_v12 = vpop.f32.mrf.mxu0  ;;  %2629 = vmatpush.bf16.msrb.mxu1 %v4033_v60  ;;  %v4109_v60 = vor.u32 %v4468_v59, %v4106_v18 }
 0x1c4   :  { %v2381_v14 = vpop.f32.mrf.mxu1  ;;  %v4016_v12 = vld [vmem:[#allocation7 + $0x80] sm:$0xf] }
 0x1c5   :  { %v4780_v23 = vpop.f32.mrf.mxu2  ;;  %v4017_v16 = vor.u32 %v4447_v19, %v4016_v12  ;;  %v4476_v14 = vld [vmem:[#allocation9 + $0x74] sm:$0xf]  ;;  %2760 = vmatpush.bf16.msra.mxu0 %v4137_v22  ;;  %v4080_v12 = vld [vmem:[#allocation9] sm:$0xf]  ;;  %v4463_v19 = vld [vmem:[#allocation9 + $0x4] sm:$0xf0] }
 0x1c6   :  { %v4141_v24 = vor.u32 %v4476_v14, %v4138_v35  ;;  %v2289_v7 = vadd.f32 %v4780_v23, %v4774_v40  ;;  %v4081_v21 = vor.u32 %v4463_v19, %v4080_v12  ;;  %v4082_v14 = vld [vmem:[#allocation9 + $0x8] sm:$0xf0] }
 0x1c7   :  { %2630 = vmatpush.bf16.msrb.mxu1 %v4025_v8  ;;  %v4089_v8 = vor.u32 %v4465_v5, %v4088_v4 }
 0x1c9   :  { %2761 = vmatpush.bf16.msra.mxu0 %v4129_v31 }
 0x1cb   :  { %2631 = vmatpush.bf16.msrb.mxu1 %v4017_v16  ;;  %v4462_v16 = vld [vmem:[#allocation9 + $0x4] sm:$0xf] }
 0x1cc   :  { %v4085_v35 = vor.u32 %v4462_v16, %v4082_v14 }
 0x1cd   :  { %v2290_v10 = vpop.f32.mrf.mxu2  ;;  %2762 = vmatpush.bf16.msra.mxu0 %v4121_v43  ;;  %v2447_v43 = vperm.slane %v2445_v41, 0 }
 0x1ce   :  { %v4090_v10 = vld [vmem:[#allocation9 + $0x18] sm:$0xf0] }
 0x1cf   :  { %2773 = vmatpush.bf16.msra.mxu1 %v4141_v24  ;;  %v4093_v13 = vor.u32 %v4464_v6, %v4090_v10 }
 0x1d1   :  { %2763 = vmatpush.bf16.msra.mxu0 %v4113_v52 }
 0x1d3   :  { %2774 = vmatpush.bf16.msra.mxu1 %v4133_v32 }
 0x1d5   :  { %v4782_v37 = vpop.f32.mrf.mxu2  ;;  %2764 = vmatpush.bf16.msra.mxu0 %v4105_v55 }
 0x1d6   :  { %v2341_v23 = vadd.f32 %v4782_v37, %v4776_v47 }
 0x1d7   :  { %2775 = vmatpush.bf16.msra.mxu1 %v4125_v45 }
 0x1d9   :  { %2765 = vmatpush.bf16.msra.mxu0 %v4097_v63 }
 0x1db   :  { %2776 = vmatpush.bf16.msra.mxu1 %v4117_v56 }
 0x1dd   :  { %v2342_v54 = vpop.f32.mrf.mxu2  ;;  %2766 = vmatpush.bf16.msra.mxu0 %v4089_v8 }
 0x1df   :  { %2777 = vmatpush.bf16.msra.mxu1 %v4109_v60 }
 0x1e1   :  { %2767 = vmatpush.bf16.msra.mxu0 %v4081_v21 }
 0x1e3   :  { %2778 = vmatpush.bf16.msra.mxu1 %v4101_v2 }
 0x1e5   :  { %v2392_v3 = vpop.f32.mrf.mxu2 }
 0x1e6   :  { %v2393_v27 = vadd.f32 %v2392_v3, %v4778_v0 }
 0x1e7   :  { %2779 = vmatpush.bf16.msra.mxu1 %v4093_v13 }
 0x1eb   :  { %2780 = vmatpush.bf16.msra.mxu1 %v4085_v35 }
 0x1ed   :  { %v2301_v11 = vpop.f32.mrf.mxu3  ;;  %v2394_v22 = vpop.f32.mrf.mxu2 }
 0x1ee   :  { %v2302_v15 = vadd.f32 %v2301_v11, %v2289_v7 }
 0x1f0   :  { %v2410_v17 = vpack.c.bf16 %v2302_v15, %v2302_v15 }
 0x1f2   :  { %2619 = vmatmul.bf16.vlgmr.msrb.gmra.mxu0 %v2410_v17  ;;  %2645 = vmatmul.bf16.vlgmr.msrb.gmra.mxu2 %v2410_v17 }
 0x1f5   :  { %v2303_v40 = vpop.f32.mrf.mxu3 }
 0x1fd   :  { %v2353_v24 = vpop.f32.mrf.mxu3 }
 0x1fe   :  { %v2354_v26 = vadd.f32 %v2353_v24, %v2341_v23 }
 0x200   :  { %v2411_v9 = vpack.c.bf16 %v2354_v26, %v2354_v26 }
 0x202   :  { %2632 = vmatmul.bf16.vlgmr.msrb.gmra.mxu1 %v2411_v9  ;;  %2658 = vmatmul.bf16.vlgmr.msrb.gmra.mxu3 %v2411_v9 }
 0x205   :  { %v2355_v38 = vpop.f32.mrf.mxu3 }
 0x20d   :  { %v2405_v28 = vpop.f32.mrf.mxu3 }
 0x20e   :  { %v2406_v29 = vadd.f32 %v2405_v28, %v2393_v27 }
 0x210   :  { %v2409_v30 = vmax.f32 %v2406_v29, 0.0 }
 0x212   :  { %v2663_v31 = vpack.c.bf16 %v2409_v30, %v2409_v30 }
 0x214   :  { %2768 = vmatmul.bf16.vlgmr.msra.gmra.mxu0 %v2663_v31  ;;  %2781 = vmatmul.bf16.vlgmr.msra.gmra.mxu1 %v2663_v31 }
 0x215   :  { %v2407_v32 = vpop.f32.mrf.mxu3 }
 0x26f   :  { %v2620_v33 = vpop.f32.mrf.mxu0 }
 0x270   :  { %v2621_v46 = vadd.f32 %v2620_v33, %v2447_v43 }
 0x275   :  { %v2646_v34 = vpop.f32.mrf.mxu2 }
 0x276   :  { %v2647_v0 = vadd.f32 %v2646_v34, %v2448_v44 }
 0x277   :  { %v2622_v39 = vpop.f32.mrf.mxu0 }
 0x27d   :  { %v2648_v25 = vpop.f32.mrf.mxu2 }
 0x27f   :  { %v2633_v47 = vpop.f32.mrf.mxu1 }
 0x280   :  { %v2634_v48 = vadd.f32 %v2633_v47, %v2621_v46 }
 0x285   :  { %v2659_v37 = vpop.f32.mrf.mxu3 }
 0x286   :  { %v2660_v49 = vadd.f32 %v2659_v37, %v2647_v0 }
 0x287   :  { %v2635_v42 = vpop.f32.mrf.mxu1 }
 0x28d   :  { %v2661_v45 = vpop.f32.mrf.mxu3 }
 0x291   :  { %v2769_v36 = vpop.f32.mrf.mxu0  ;;  %v2782_v50 = vpop.f32.mrf.mxu1 }
 0x292   :  { %v2786_v51 = vadd.f32 %v2769_v36, %v2634_v48  ;;  %v2787_v52 = vadd.f32 %v2782_v50, %v2660_v49 }
 0x294   :  { %2788 = vst [vmem:[%s4801_s6] sm:$0xff] %v2786_v51 }
 0x295   :  { %2789 = vst [vmem:[%s4801_s6 + $0x8] sm:$0xff] %v2787_v52 }
 0x299   :  { %v2771_v53 = vpop.f32.mrf.mxu0  ;;  %v2784_v54 = vpop.f32.mrf.mxu1 }
 0x29a   :  { %2794 = vsyncpa [#allocation3], 1 }
 0x29b   :  { %2795 = vsyncpa [#allocation5], 1 }
 0x29c   :  { %2796 = vsyncpa [#allocation8], 1 }
 0x29d   :  { %2797 = vsyncpa [#allocation11], 1 }

</bundles_post_ra>
